<compile_context>
chip_gen: v5e
topology: v5e:2x2
jax: 0.10.0
libtpu: 0.0.40
codegen_flags: <defaults>
</compile_context>

<pallas_src>
import functools

import jax
import jax.numpy as jnp
from jax import lax
from jax.experimental import pallas as pl
from jax.experimental.pallas import tpu as pltpu

_INV_SQRT2 = 0.7071067811865476


def _layer_norm(x, gamma, beta, eps=1e-5):
    # PyTorch LayerNorm: biased variance over last dim, eps inside rsqrt.
    mu = jnp.mean(x, axis=-1, keepdims=True)
    xc = x - mu
    var = jnp.mean(xc * xc, axis=-1, keepdims=True)
    return xc * lax.rsqrt(var + eps) * gamma + beta


def _gelu_exact(x):
    # nn.GELU() default = exact erf-based GELU.
    return 0.5 * x * (1.0 + lax.erf(x * _INV_SQRT2))


def transformer_layer_kernel(
    num_heads, hid_chunk,
    # inputs
    x_q_ref, x_kv_ref,
    wq_ref, wkv_ref, bq_ref, bkv_ref, wo_ref, bo_ref,
    g1_ref, be1_ref,
    w1_ref, b1_ref, w2_ref, b2_ref, g2_ref, be2_ref,
    # outputs
    o_ref,
    # scratch
    attn_sc,
):
    x_q = x_q_ref[...]                      # (TQ, E) fp32 - query-row tile
    x_kv = x_kv_ref[...]                    # (S,  E) fp32 - full sequence (keys/values)
    TQ, E = x_q.shape
    dh = E // num_heads

    x_q_b = x_q.astype(jnp.bfloat16)
    x_kv_b = x_kv.astype(jnp.bfloat16)

    # --- projections (bf16 MXU, fp32 accumulate; biases added in fp32) ------
    # 1/sqrt(dh) already folded into wq/bq in the wrapper.
    q = jnp.dot(x_q_b, wq_ref[...], preferred_element_type=jnp.float32) + bq_ref[...]
    kv = jnp.dot(x_kv_b, wkv_ref[...], preferred_element_type=jnp.float32) + bkv_ref[...]
    k = kv[:, :E]
    v = kv[:, E:]

    # --- per-head attention, outputs written into a VMEM slab (no concat) ---
    for h in range(num_heads):              # static unrolled loop
        sl = slice(h * dh, (h + 1) * dh)
        qh = q[:, sl].astype(jnp.bfloat16)          # (TQ, dh)
        kh = k[:, sl].astype(jnp.bfloat16)          # (S,  dh)
        vh = v[:, sl].astype(jnp.bfloat16)          # (S,  dh)
        s = lax.dot_general(qh, kh, (((1,), (1,)), ((), ())),
                            preferred_element_type=jnp.float32)   # (TQ, S)
        s = s - jnp.max(s, axis=-1, keepdims=True)                # fp32 softmax
        p = jnp.exp(s)
        p = p * pl.reciprocal(jnp.sum(p, axis=-1, keepdims=True), approx=True)
        attn_sc[:, sl] = jnp.dot(p.astype(jnp.bfloat16), vh,
                                 preferred_element_type=jnp.float32)

    attn = jnp.dot(attn_sc[...].astype(jnp.bfloat16), wo_ref[...],
                   preferred_element_type=jnp.float32) + bo_ref[...]

    # --- residual + norm1 (fp32) --------------------------------------------
    h1 = _layer_norm(x_q + attn, g1_ref[...], be1_ref[...])

    # --- FFN: fc1 -> GELU -> fc2, chunked over HID, fp32 accumulate ----------
    h1_b = h1.astype(jnp.bfloat16)
    HID = w1_ref.shape[1]
    ff = None
    for c0 in range(0, HID, hid_chunk):      # static unrolled loop
        csl = slice(c0, c0 + hid_chunk)
        col = jnp.dot(h1_b, w1_ref[:, csl],
                      preferred_element_type=jnp.float32) + b1_ref[:, csl]
        col = _gelu_exact(col)               # fp32 GELU
        part = jnp.dot(col.astype(jnp.bfloat16), w2_ref[csl, :],
                       preferred_element_type=jnp.float32)
        ff = part if ff is None else ff + part
    ff = ff + b2_ref[...]

    o_ref[...] = _layer_norm(ff + h1, g2_ref[...], be2_ref[...])


def _pick_query_tile(S):
    for t in (256, 128):
        if S % t == 0:
            return t
    return S


def _pick_hid_chunk(HID):
    for c in (512, 256, 128):
        if HID > c and HID % c == 0:
            return c
    return HID


def transformer_layer(x, params, num_heads):
    B, S, E = x.shape
    (wq, wk, wv, bq, bk, bv, wo, bo,
     g1, be1, w1, b1, w2, b2, g2, be2) = params
    HID = w1.shape[1]
    dh = E // num_heads
    scale = 1.0 / float(dh) ** 0.5

    # Fold attention scale into the Q projection; fuse K|V; cast weights to bf16
    # (halves weight VMEM + HBM bytes). Biases / LN params stay fp32.
    wq_s = (wq * scale).astype(jnp.bfloat16)
    bq_s = bq * scale
    wkv = jnp.concatenate([wk, wv], axis=1).astype(jnp.bfloat16)   # (E, 2E)
    bkv = jnp.concatenate([bk, bv], axis=1)                        # (1, 2E)

    kparams = [
        wq_s, wkv, bq_s, bkv,
        wo.astype(jnp.bfloat16), bo, g1, be1,
        w1.astype(jnp.bfloat16), b1, w2.astype(jnp.bfloat16), b2, g2, be2,
    ]

    TQ = _pick_query_tile(S)
    hid_chunk = _pick_hid_chunk(HID)
    kernel = functools.partial(transformer_layer_kernel, num_heads, hid_chunk)

    def _run(single_buffer_weights):
        def _param_spec(arr):
            nd = arr.ndim
            kwargs = {}
            if single_buffer_weights:
                # Weights are grid-invariant: no need to double-buffer them.
                kwargs["pipeline_mode"] = pl.Buffered(buffer_count=1)
            return pl.BlockSpec(arr.shape, lambda b, qi, _nd=nd: (0,) * _nd, **kwargs)

        grid_spec = pltpu.PrefetchScalarGridSpec(
            num_scalar_prefetch=0,
            grid=(B, S // TQ),
            in_specs=(
                [pl.BlockSpec((None, TQ, E), lambda b, qi: (b, qi, 0)),   # query tile
                 pl.BlockSpec((None, S, E), lambda b, qi: (b, 0, 0))]     # full seq for K/V
                + [_param_spec(p) for p in kparams]
            ),
            out_specs=pl.BlockSpec((None, TQ, E), lambda b, qi: (b, qi, 0)),
            scratch_shapes=[pltpu.VMEM((TQ, E), jnp.float32)],
        )
        fn = pl.pallas_call(
            kernel,
            out_shape=jax.ShapeDtypeStruct((B, S, E), jnp.float32),
            grid_spec=grid_spec,
            compiler_params=pltpu.CompilerParams(
                dimension_semantics=("parallel", "parallel"),
                # Raise scoped VMEM above the 16/32 MiB defaults; scale up for
                # large E/HID (stay <= 64 MiB for v7x).
                vmem_limit_bytes=64 * 1024 * 1024,
            ),
        )
        return jax.block_until_ready(fn(x, x, *kparams))

    try:
        return _run(single_buffer_weights=True)
    except Exception:
        # Fallback if this JAX build rejects pl.Buffered(buffer_count=1).
        return _run(single_buffer_weights=False)


def make_params(key, embed_dim, num_heads, hidden_dim):
    """Deterministic synthetic parameters (shapes match the PyTorch module).

    Linear weights are stored pre-transposed (kernel computes x @ W + b); 1-D
    params are shaped (1, dim) for lane-dim broadcasting.
    """
    E, HID = embed_dim, hidden_dim
    ks = jax.random.split(key, 8)
    s = 0.05
    wq = s * jax.random.normal(ks[0], (E, E), jnp.float32)
    wk = s * jax.random.normal(ks[1], (E, E), jnp.float32)
    wv = s * jax.random.normal(ks[2], (E, E), jnp.float32)
    bq = s * jax.random.normal(ks[3], (1, E), jnp.float32)
    bk = jnp.zeros((1, E), jnp.float32)
    bv = jnp.zeros((1, E), jnp.float32)
    wo = s * jax.random.normal(ks[4], (E, E), jnp.float32)
    bo = jnp.zeros((1, E), jnp.float32)
    g1 = jnp.ones((1, E), jnp.float32)
    be1 = jnp.zeros((1, E), jnp.float32)
    w1 = s * jax.random.normal(ks[5], (E, HID), jnp.float32)
    b1 = s * jax.random.normal(ks[6], (1, HID), jnp.float32)
    w2 = s * jax.random.normal(ks[7], (HID, E), jnp.float32)
    b2 = jnp.zeros((1, E), jnp.float32)
    g2 = jnp.ones((1, E), jnp.float32)
    be2 = jnp.zeros((1, E), jnp.float32)
    return [wq, wk, wv, bq, bk, bv, wo, bo, g1, be1, w1, b1, w2, b2, g2, be2]


if __name__ == "__main__":
    # Small demo shapes (note: E=32 / dh=8 are lane-underfilled; pad E and dh to
    # multiples of 128 for production-sized models).
    B, S, E, H, HID = 2, 8, 32, 4, 64
    key = jax.random.PRNGKey(0)
    kx, kp = jax.random.split(key)
    x = jax.random.normal(kx, (B, S, E), jnp.float32)
    params = make_params(kp, E, H, HID)

    out = transformer_layer(x, params, H)
    jax.block_until_ready(out)
    assert out.shape == (B, S, E) and out.dtype == jnp.float32
    print("KERNEL_OK")
</pallas_src>

<mosaic_0001>
module attributes {stable_mosaic.version = 11 : i64} {
  func.func @transformer_layer_kernel(%arg0: i32, %arg1: i32, %arg2: memref<1x8x32xf32, #tpu.memory_space<vmem>>, %arg3: memref<1x8x32xf32, #tpu.memory_space<vmem>>, %arg4: memref<32x32xbf16, #tpu.memory_space<vmem>>, %arg5: memref<32x64xbf16, #tpu.memory_space<vmem>>, %arg6: memref<1x32xf32, #tpu.memory_space<vmem>>, %arg7: memref<1x64xf32, #tpu.memory_space<vmem>>, %arg8: memref<32x32xbf16, #tpu.memory_space<vmem>>, %arg9: memref<1x32xf32, #tpu.memory_space<vmem>>, %arg10: memref<1x32xf32, #tpu.memory_space<vmem>>, %arg11: memref<1x32xf32, #tpu.memory_space<vmem>>, %arg12: memref<32x64xbf16, #tpu.memory_space<vmem>>, %arg13: memref<1x64xf32, #tpu.memory_space<vmem>>, %arg14: memref<64x32xbf16, #tpu.memory_space<vmem>>, %arg15: memref<1x32xf32, #tpu.memory_space<vmem>>, %arg16: memref<1x32xf32, #tpu.memory_space<vmem>>, %arg17: memref<1x32xf32, #tpu.memory_space<vmem>>, %arg18: memref<1x8x32xf32, #tpu.memory_space<vmem>>, %arg19: memref<8x32xf32, #tpu.memory_space<vmem>>) attributes {dimension_semantics = [#tpu.dimension_semantics<parallel>, #tpu.dimension_semantics<parallel>], iteration_bounds = array<i64: 2, 1>, scalar_prefetch = 0 : i64, scratch_operands = 1 : i64, tpu.core_type = #tpu.core_type<tc>, window_params = [{transform_indices = @transform_0, window_bounds = array<i64: 1, 8, 32>}, {transform_indices = @transform_1, window_bounds = array<i64: 1, 8, 32>}, {pipeline_mode = #tpu.pipeline_mode<synchronous>, transform_indices = @transform_2, window_bounds = array<i64: 32, 32>}, {pipeline_mode = #tpu.pipeline_mode<synchronous>, transform_indices = @transform_3, window_bounds = array<i64: 32, 64>}, {pipeline_mode = #tpu.pipeline_mode<synchronous>, transform_indices = @transform_4, window_bounds = array<i64: 1, 32>}, {pipeline_mode = #tpu.pipeline_mode<synchronous>, transform_indices = @transform_5, window_bounds = array<i64: 1, 64>}, {pipeline_mode = #tpu.pipeline_mode<synchronous>, transform_indices = @transform_6, window_bounds = array<i64: 32, 32>}, {pipeline_mode = #tpu.pipeline_mode<synchronous>, transform_indices = @transform_7, window_bounds = array<i64: 1, 32>}, {pipeline_mode = #tpu.pipeline_mode<synchronous>, transform_indices = @transform_8, window_bounds = array<i64: 1, 32>}, {pipeline_mode = #tpu.pipeline_mode<synchronous>, transform_indices = @transform_9, window_bounds = array<i64: 1, 32>}, {pipeline_mode = #tpu.pipeline_mode<synchronous>, transform_indices = @transform_10, window_bounds = array<i64: 32, 64>}, {pipeline_mode = #tpu.pipeline_mode<synchronous>, transform_indices = @transform_11, window_bounds = array<i64: 1, 64>}, {pipeline_mode = #tpu.pipeline_mode<synchronous>, transform_indices = @transform_12, window_bounds = array<i64: 64, 32>}, {pipeline_mode = #tpu.pipeline_mode<synchronous>, transform_indices = @transform_13, window_bounds = array<i64: 1, 32>}, {pipeline_mode = #tpu.pipeline_mode<synchronous>, transform_indices = @transform_14, window_bounds = array<i64: 1, 32>}, {pipeline_mode = #tpu.pipeline_mode<synchronous>, transform_indices = @transform_15, window_bounds = array<i64: 1, 32>}, {transform_indices = @transform_16, window_bounds = array<i64: 1, 8, 32>}]} {
    %c0 = arith.constant 0 : index
    %c0_0 = arith.constant 0 : index
    %c0_1 = arith.constant 0 : index
    %0 = vector.load %arg2[%c0, %c0_0, %c0_1] : memref<1x8x32xf32, #tpu.memory_space<vmem>>, vector<1x8x32xf32>
    %1 = vector.shape_cast %0 : vector<1x8x32xf32> to vector<8x32xf32>
    %c0_2 = arith.constant 0 : index
    %c0_3 = arith.constant 0 : index
    %c0_4 = arith.constant 0 : index
    %2 = vector.load %arg3[%c0_2, %c0_3, %c0_4] : memref<1x8x32xf32, #tpu.memory_space<vmem>>, vector<1x8x32xf32>
    %3 = vector.shape_cast %2 : vector<1x8x32xf32> to vector<8x32xf32>
    %4 = arith.truncf %1 : vector<8x32xf32> to vector<8x32xbf16>
    %5 = arith.truncf %3 : vector<8x32xf32> to vector<8x32xbf16>
    %c0_5 = arith.constant 0 : index
    %c0_6 = arith.constant 0 : index
    %6 = vector.load %arg4[%c0_5, %c0_6] : memref<32x32xbf16, #tpu.memory_space<vmem>>, vector<32x32xbf16>
    %cst = arith.constant dense<0.000000e+00> : vector<8x32xf32>
    %7 = tpu.matmul %4, %6, %cst {dimension_numbers = #tpu.dot_dimension_numbers<[1], [0], [0], [1], [0, 0, 1, 1], [], []>} : vector<8x32xbf16>, vector<32x32xbf16>, vector<8x32xf32> -> vector<8x32xf32>
    %c0_7 = arith.constant 0 : index
    %c0_8 = arith.constant 0 : index
    %8 = vector.load %arg6[%c0_7, %c0_8] : memref<1x32xf32, #tpu.memory_space<vmem>>, vector<1x32xf32>
    %9 = vector.broadcast %8 : vector<1x32xf32> to vector<8x32xf32>
    %10 = arith.addf %7, %9 : vector<8x32xf32>
    %c0_9 = arith.constant 0 : index
    %c0_10 = arith.constant 0 : index
    %11 = vector.load %arg5[%c0_9, %c0_10] : memref<32x64xbf16, #tpu.memory_space<vmem>>, vector<32x64xbf16>
    %cst_11 = arith.constant dense<0.000000e+00> : vector<8x64xf32>
    %12 = tpu.matmul %5, %11, %cst_11 {dimension_numbers = #tpu.dot_dimension_numbers<[1], [0], [0], [1], [0, 0, 1, 1], [], []>} : vector<8x32xbf16>, vector<32x64xbf16>, vector<8x64xf32> -> vector<8x64xf32>
    %c0_12 = arith.constant 0 : index
    %c0_13 = arith.constant 0 : index
    %13 = vector.load %arg7[%c0_12, %c0_13] : memref<1x64xf32, #tpu.memory_space<vmem>>, vector<1x64xf32>
    %14 = vector.broadcast %13 : vector<1x64xf32> to vector<8x64xf32>
    %15 = arith.addf %12, %14 : vector<8x64xf32>
    %16 = vector.extract_strided_slice %15 {offsets = [0, 0], sizes = [8, 32], strides = [1, 1]} : vector<8x64xf32> to vector<8x32xf32>
    %17 = vector.extract_strided_slice %15 {offsets = [0, 32], sizes = [8, 32], strides = [1, 1]} : vector<8x64xf32> to vector<8x32xf32>
    %18 = vector.extract_strided_slice %10 {offsets = [0, 0], sizes = [8, 8], strides = [1, 1]} : vector<8x32xf32> to vector<8x8xf32>
    %19 = arith.truncf %18 : vector<8x8xf32> to vector<8x8xbf16>
    %20 = vector.extract_strided_slice %16 {offsets = [0, 0], sizes = [8, 8], strides = [1, 1]} : vector<8x32xf32> to vector<8x8xf32>
    %21 = arith.truncf %20 : vector<8x8xf32> to vector<8x8xbf16>
    %22 = vector.extract_strided_slice %17 {offsets = [0, 0], sizes = [8, 8], strides = [1, 1]} : vector<8x32xf32> to vector<8x8xf32>
    %23 = arith.truncf %22 : vector<8x8xf32> to vector<8x8xbf16>
    %cst_14 = arith.constant dense<0.000000e+00> : vector<8x8xf32>
    %24 = tpu.matmul %19, %21, %cst_14 {dimension_numbers = #tpu.dot_dimension_numbers<[1], [1], [0], [0], [0, 0, 1, 0], [], []>} : vector<8x8xbf16>, vector<8x8xbf16>, vector<8x8xf32> -> vector<8x8xf32>
    %cst_15 = arith.constant dense<0xFF800000> : vector<8xf32>
    %25 = vector.multi_reduction <maximumf>, %24, %cst_15 [1] : vector<8x8xf32> to vector<8xf32>
    %26 = vector.shape_cast %25 : vector<8xf32> to vector<8x1xf32>
    %27 = vector.broadcast %26 : vector<8x1xf32> to vector<8x8xf32>
    %28 = arith.subf %24, %27 : vector<8x8xf32>
    %29 = math.exp %28 : vector<8x8xf32>
    %cst_16 = arith.constant dense<0.000000e+00> : vector<8xf32>
    %30 = vector.multi_reduction <add>, %29, %cst_16 [1] : vector<8x8xf32> to vector<8xf32>
    %31 = vector.shape_cast %30 : vector<8xf32> to vector<8x1xf32>
    %32 = tpu.reciprocal %31 {approx = true} : vector<8x1xf32> -> vector<8x1xf32>
    %33 = vector.broadcast %32 : vector<8x1xf32> to vector<8x8xf32>
    %34 = arith.mulf %29, %33 : vector<8x8xf32>
    %35 = arith.truncf %34 : vector<8x8xf32> to vector<8x8xbf16>
    %cst_17 = arith.constant dense<0.000000e+00> : vector<8x8xf32>
    %36 = tpu.matmul %35, %23, %cst_17 {dimension_numbers = #tpu.dot_dimension_numbers<[1], [0], [0], [1], [0, 0, 1, 1], [], []>} : vector<8x8xbf16>, vector<8x8xbf16>, vector<8x8xf32> -> vector<8x8xf32>
    %c0_18 = arith.constant 0 : index
    %c0_19 = arith.constant 0 : index
    %37 = vector.load %arg19[%c0_18, %c0_19] : memref<8x32xf32, #tpu.memory_space<vmem>>, vector<8x8xf32>
    tpu.vector_store %arg19[%c0_18, %c0_19], %36 {strides = array<i32>} : memref<8x32xf32, #tpu.memory_space<vmem>>, vector<8x8xf32>,
    %38 = vector.extract_strided_slice %10 {offsets = [0, 8], sizes = [8, 8], strides = [1, 1]} : vector<8x32xf32> to vector<8x8xf32>
    %39 = arith.truncf %38 : vector<8x8xf32> to vector<8x8xbf16>
    %40 = vector.extract_strided_slice %16 {offsets = [0, 8], sizes = [8, 8], strides = [1, 1]} : vector<8x32xf32> to vector<8x8xf32>
    %41 = arith.truncf %40 : vector<8x8xf32> to vector<8x8xbf16>
    %42 = vector.extract_strided_slice %17 {offsets = [0, 8], sizes = [8, 8], strides = [1, 1]} : vector<8x32xf32> to vector<8x8xf32>
    %43 = arith.truncf %42 : vector<8x8xf32> to vector<8x8xbf16>
    %cst_20 = arith.constant dense<0.000000e+00> : vector<8x8xf32>
    %44 = tpu.matmul %39, %41, %cst_20 {dimension_numbers = #tpu.dot_dimension_numbers<[1], [1], [0], [0], [0, 0, 1, 0], [], []>} : vector<8x8xbf16>, vector<8x8xbf16>, vector<8x8xf32> -> vector<8x8xf32>
    %cst_21 = arith.constant dense<0xFF800000> : vector<8xf32>
    %45 = vector.multi_reduction <maximumf>, %44, %cst_21 [1] : vector<8x8xf32> to vector<8xf32>
    %46 = vector.shape_cast %45 : vector<8xf32> to vector<8x1xf32>
    %47 = vector.broadcast %46 : vector<8x1xf32> to vector<8x8xf32>
    %48 = arith.subf %44, %47 : vector<8x8xf32>
    %49 = math.exp %48 : vector<8x8xf32>
    %cst_22 = arith.constant dense<0.000000e+00> : vector<8xf32>
    %50 = vector.multi_reduction <add>, %49, %cst_22 [1] : vector<8x8xf32> to vector<8xf32>
    %51 = vector.shape_cast %50 : vector<8xf32> to vector<8x1xf32>
    %52 = tpu.reciprocal %51 {approx = true} : vector<8x1xf32> -> vector<8x1xf32>
    %53 = vector.broadcast %52 : vector<8x1xf32> to vector<8x8xf32>
    %54 = arith.mulf %49, %53 : vector<8x8xf32>
    %55 = arith.truncf %54 : vector<8x8xf32> to vector<8x8xbf16>
    %cst_23 = arith.constant dense<0.000000e+00> : vector<8x8xf32>
    %56 = tpu.matmul %55, %43, %cst_23 {dimension_numbers = #tpu.dot_dimension_numbers<[1], [0], [0], [1], [0, 0, 1, 1], [], []>} : vector<8x8xbf16>, vector<8x8xbf16>, vector<8x8xf32> -> vector<8x8xf32>
    %c0_24 = arith.constant 0 : index
    %c8 = arith.constant 8 : index
    %57 = vector.load %arg19[%c0_24, %c8] : memref<8x32xf32, #tpu.memory_space<vmem>>, vector<8x8xf32>
    tpu.vector_store %arg19[%c0_24, %c8], %56 {strides = array<i32>} : memref<8x32xf32, #tpu.memory_space<vmem>>, vector<8x8xf32>,
    %58 = vector.extract_strided_slice %10 {offsets = [0, 16], sizes = [8, 8], strides = [1, 1]} : vector<8x32xf32> to vector<8x8xf32>
    %59 = arith.truncf %58 : vector<8x8xf32> to vector<8x8xbf16>
    %60 = vector.extract_strided_slice %16 {offsets = [0, 16], sizes = [8, 8], strides = [1, 1]} : vector<8x32xf32> to vector<8x8xf32>
    %61 = arith.truncf %60 : vector<8x8xf32> to vector<8x8xbf16>
    %62 = vector.extract_strided_slice %17 {offsets = [0, 16], sizes = [8, 8], strides = [1, 1]} : vector<8x32xf32> to vector<8x8xf32>
    %63 = arith.truncf %62 : vector<8x8xf32> to vector<8x8xbf16>
    %cst_25 = arith.constant dense<0.000000e+00> : vector<8x8xf32>
    %64 = tpu.matmul %59, %61, %cst_25 {dimension_numbers = #tpu.dot_dimension_numbers<[1], [1], [0], [0], [0, 0, 1, 0], [], []>} : vector<8x8xbf16>, vector<8x8xbf16>, vector<8x8xf32> -> vector<8x8xf32>
    %cst_26 = arith.constant dense<0xFF800000> : vector<8xf32>
    %65 = vector.multi_reduction <maximumf>, %64, %cst_26 [1] : vector<8x8xf32> to vector<8xf32>
    %66 = vector.shape_cast %65 : vector<8xf32> to vector<8x1xf32>
    %67 = vector.broadcast %66 : vector<8x1xf32> to vector<8x8xf32>
    %68 = arith.subf %64, %67 : vector<8x8xf32>
    %69 = math.exp %68 : vector<8x8xf32>
    %cst_27 = arith.constant dense<0.000000e+00> : vector<8xf32>
    %70 = vector.multi_reduction <add>, %69, %cst_27 [1] : vector<8x8xf32> to vector<8xf32>
    %71 = vector.shape_cast %70 : vector<8xf32> to vector<8x1xf32>
    %72 = tpu.reciprocal %71 {approx = true} : vector<8x1xf32> -> vector<8x1xf32>
    %73 = vector.broadcast %72 : vector<8x1xf32> to vector<8x8xf32>
    %74 = arith.mulf %69, %73 : vector<8x8xf32>
    %75 = arith.truncf %74 : vector<8x8xf32> to vector<8x8xbf16>
    %cst_28 = arith.constant dense<0.000000e+00> : vector<8x8xf32>
    %76 = tpu.matmul %75, %63, %cst_28 {dimension_numbers = #tpu.dot_dimension_numbers<[1], [0], [0], [1], [0, 0, 1, 1], [], []>} : vector<8x8xbf16>, vector<8x8xbf16>, vector<8x8xf32> -> vector<8x8xf32>
    %c0_29 = arith.constant 0 : index
    %c16 = arith.constant 16 : index
    %77 = vector.load %arg19[%c0_29, %c16] : memref<8x32xf32, #tpu.memory_space<vmem>>, vector<8x8xf32>
    tpu.vector_store %arg19[%c0_29, %c16], %76 {strides = array<i32>} : memref<8x32xf32, #tpu.memory_space<vmem>>, vector<8x8xf32>,
    %78 = vector.extract_strided_slice %10 {offsets = [0, 24], sizes = [8, 8], strides = [1, 1]} : vector<8x32xf32> to vector<8x8xf32>
    %79 = arith.truncf %78 : vector<8x8xf32> to vector<8x8xbf16>
    %80 = vector.extract_strided_slice %16 {offsets = [0, 24], sizes = [8, 8], strides = [1, 1]} : vector<8x32xf32> to vector<8x8xf32>
    %81 = arith.truncf %80 : vector<8x8xf32> to vector<8x8xbf16>
    %82 = vector.extract_strided_slice %17 {offsets = [0, 24], sizes = [8, 8], strides = [1, 1]} : vector<8x32xf32> to vector<8x8xf32>
    %83 = arith.truncf %82 : vector<8x8xf32> to vector<8x8xbf16>
    %cst_30 = arith.constant dense<0.000000e+00> : vector<8x8xf32>
    %84 = tpu.matmul %79, %81, %cst_30 {dimension_numbers = #tpu.dot_dimension_numbers<[1], [1], [0], [0], [0, 0, 1, 0], [], []>} : vector<8x8xbf16>, vector<8x8xbf16>, vector<8x8xf32> -> vector<8x8xf32>
    %cst_31 = arith.constant dense<0xFF800000> : vector<8xf32>
    %85 = vector.multi_reduction <maximumf>, %84, %cst_31 [1] : vector<8x8xf32> to vector<8xf32>
    %86 = vector.shape_cast %85 : vector<8xf32> to vector<8x1xf32>
    %87 = vector.broadcast %86 : vector<8x1xf32> to vector<8x8xf32>
    %88 = arith.subf %84, %87 : vector<8x8xf32>
    %89 = math.exp %88 : vector<8x8xf32>
    %cst_32 = arith.constant dense<0.000000e+00> : vector<8xf32>
    %90 = vector.multi_reduction <add>, %89, %cst_32 [1] : vector<8x8xf32> to vector<8xf32>
    %91 = vector.shape_cast %90 : vector<8xf32> to vector<8x1xf32>
    %92 = tpu.reciprocal %91 {approx = true} : vector<8x1xf32> -> vector<8x1xf32>
    %93 = vector.broadcast %92 : vector<8x1xf32> to vector<8x8xf32>
    %94 = arith.mulf %89, %93 : vector<8x8xf32>
    %95 = arith.truncf %94 : vector<8x8xf32> to vector<8x8xbf16>
    %cst_33 = arith.constant dense<0.000000e+00> : vector<8x8xf32>
    %96 = tpu.matmul %95, %83, %cst_33 {dimension_numbers = #tpu.dot_dimension_numbers<[1], [0], [0], [1], [0, 0, 1, 1], [], []>} : vector<8x8xbf16>, vector<8x8xbf16>, vector<8x8xf32> -> vector<8x8xf32>
    %c0_34 = arith.constant 0 : index
    %c24 = arith.constant 24 : index
    %97 = vector.load %arg19[%c0_34, %c24] : memref<8x32xf32, #tpu.memory_space<vmem>>, vector<8x8xf32>
    tpu.vector_store %arg19[%c0_34, %c24], %96 {strides = array<i32>} : memref<8x32xf32, #tpu.memory_space<vmem>>, vector<8x8xf32>,
    %c0_35 = arith.constant 0 : index
    %c0_36 = arith.constant 0 : index
    %98 = vector.load %arg19[%c0_35, %c0_36] : memref<8x32xf32, #tpu.memory_space<vmem>>, vector<8x32xf32>
    %99 = arith.truncf %98 : vector<8x32xf32> to vector<8x32xbf16>
    %c0_37 = arith.constant 0 : index
    %c0_38 = arith.constant 0 : index
    %100 = vector.load %arg8[%c0_37, %c0_38] : memref<32x32xbf16, #tpu.memory_space<vmem>>, vector<32x32xbf16>
    %cst_39 = arith.constant dense<0.000000e+00> : vector<8x32xf32>
    %101 = tpu.matmul %99, %100, %cst_39 {dimension_numbers = #tpu.dot_dimension_numbers<[1], [0], [0], [1], [0, 0, 1, 1], [], []>} : vector<8x32xbf16>, vector<32x32xbf16>, vector<8x32xf32> -> vector<8x32xf32>
    %c0_40 = arith.constant 0 : index
    %c0_41 = arith.constant 0 : index
    %102 = vector.load %arg9[%c0_40, %c0_41] : memref<1x32xf32, #tpu.memory_space<vmem>>, vector<1x32xf32>
    %103 = vector.broadcast %102 : vector<1x32xf32> to vector<8x32xf32>
    %104 = arith.addf %101, %103 : vector<8x32xf32>
    %105 = arith.addf %1, %104 : vector<8x32xf32>
    %c0_42 = arith.constant 0 : index
    %c0_43 = arith.constant 0 : index
    %106 = vector.load %arg10[%c0_42, %c0_43] : memref<1x32xf32, #tpu.memory_space<vmem>>, vector<1x32xf32>
    %c0_44 = arith.constant 0 : index
    %c0_45 = arith.constant 0 : index
    %107 = vector.load %arg11[%c0_44, %c0_45] : memref<1x32xf32, #tpu.memory_space<vmem>>, vector<1x32xf32>
    %cst_46 = arith.constant dense<0.000000e+00> : vector<8xf32>
    %108 = vector.multi_reduction <add>, %105, %cst_46 [1] : vector<8x32xf32> to vector<8xf32>
    %109 = vector.shape_cast %108 : vector<8xf32> to vector<8x1xf32>
    %cst_47 = arith.constant 3.200000e+01 : f32
    %110 = vector.broadcast %cst_47 : f32 to vector<8x1xf32>
    %111 = arith.divf %109, %110 : vector<8x1xf32>
    %112 = vector.broadcast %111 : vector<8x1xf32> to vector<8x32xf32>
    %113 = arith.subf %105, %112 : vector<8x32xf32>
    %114 = arith.mulf %113, %113 : vector<8x32xf32>
    %cst_48 = arith.constant dense<0.000000e+00> : vector<8xf32>
    %115 = vector.multi_reduction <add>, %114, %cst_48 [1] : vector<8x32xf32> to vector<8xf32>
    %116 = vector.shape_cast %115 : vector<8xf32> to vector<8x1xf32>
    %cst_49 = arith.constant 3.200000e+01 : f32
    %117 = vector.broadcast %cst_49 : f32 to vector<8x1xf32>
    %118 = arith.divf %116, %117 : vector<8x1xf32>
    %cst_50 = arith.constant 9.99999974E-6 : f32
    %119 = vector.broadcast %cst_50 : f32 to vector<8x1xf32>
    %120 = arith.addf %118, %119 : vector<8x1xf32>
    %121 = math.rsqrt %120 : vector<8x1xf32>
    %122 = vector.broadcast %121 : vector<8x1xf32> to vector<8x32xf32>
    %123 = arith.mulf %113, %122 : vector<8x32xf32>
    %124 = vector.broadcast %106 : vector<1x32xf32> to vector<8x32xf32>
    %125 = arith.mulf %123, %124 : vector<8x32xf32>
    %126 = vector.broadcast %107 : vector<1x32xf32> to vector<8x32xf32>
    %127 = arith.addf %125, %126 : vector<8x32xf32>
    %128 = arith.truncf %127 : vector<8x32xf32> to vector<8x32xbf16>
    %c0_51 = arith.constant 0 : index
    %c0_52 = arith.constant 0 : index
    %129 = vector.load %arg12[%c0_51, %c0_52] : memref<32x64xbf16, #tpu.memory_space<vmem>>, vector<32x64xbf16>
    %cst_53 = arith.constant dense<0.000000e+00> : vector<8x64xf32>
    %130 = tpu.matmul %128, %129, %cst_53 {dimension_numbers = #tpu.dot_dimension_numbers<[1], [0], [0], [1], [0, 0, 1, 1], [], []>} : vector<8x32xbf16>, vector<32x64xbf16>, vector<8x64xf32> -> vector<8x64xf32>
    %c0_54 = arith.constant 0 : index
    %c0_55 = arith.constant 0 : index
    %131 = vector.load %arg13[%c0_54, %c0_55] : memref<1x64xf32, #tpu.memory_space<vmem>>, vector<1x64xf32>
    %132 = vector.broadcast %131 : vector<1x64xf32> to vector<8x64xf32>
    %133 = arith.addf %130, %132 : vector<8x64xf32>
    %cst_56 = arith.constant 5.000000e-01 : f32
    %134 = vector.broadcast %cst_56 : f32 to vector<8x64xf32>
    %135 = arith.mulf %134, %133 : vector<8x64xf32>
    %cst_57 = arith.constant 0.707106769 : f32
    %136 = vector.broadcast %cst_57 : f32 to vector<8x64xf32>
    %137 = arith.mulf %133, %136 : vector<8x64xf32>
    %138 = math.erf %137 : vector<8x64xf32>
    %cst_58 = arith.constant 1.000000e+00 : f32
    %139 = vector.broadcast %cst_58 : f32 to vector<8x64xf32>
    %140 = arith.addf %139, %138 : vector<8x64xf32>
    %141 = arith.mulf %135, %140 : vector<8x64xf32>
    %142 = arith.truncf %141 : vector<8x64xf32> to vector<8x64xbf16>
    %c0_59 = arith.constant 0 : index
    %c0_60 = arith.constant 0 : index
    %143 = vector.load %arg14[%c0_59, %c0_60] : memref<64x32xbf16, #tpu.memory_space<vmem>>, vector<64x32xbf16>
    %cst_61 = arith.constant dense<0.000000e+00> : vector<8x32xf32>
    %144 = tpu.matmul %142, %143, %cst_61 {dimension_numbers = #tpu.dot_dimension_numbers<[1], [0], [0], [1], [0, 0, 1, 1], [], []>} : vector<8x64xbf16>, vector<64x32xbf16>, vector<8x32xf32> -> vector<8x32xf32>
    %c0_62 = arith.constant 0 : index
    %c0_63 = arith.constant 0 : index
    %145 = vector.load %arg15[%c0_62, %c0_63] : memref<1x32xf32, #tpu.memory_space<vmem>>, vector<1x32xf32>
    %146 = vector.broadcast %145 : vector<1x32xf32> to vector<8x32xf32>
    %147 = arith.addf %144, %146 : vector<8x32xf32>
    %148 = arith.addf %147, %127 : vector<8x32xf32>
    %c0_64 = arith.constant 0 : index
    %c0_65 = arith.constant 0 : index
    %149 = vector.load %arg16[%c0_64, %c0_65] : memref<1x32xf32, #tpu.memory_space<vmem>>, vector<1x32xf32>
    %c0_66 = arith.constant 0 : index
    %c0_67 = arith.constant 0 : index
    %150 = vector.load %arg17[%c0_66, %c0_67] : memref<1x32xf32, #tpu.memory_space<vmem>>, vector<1x32xf32>
    %cst_68 = arith.constant dense<0.000000e+00> : vector<8xf32>
    %151 = vector.multi_reduction <add>, %148, %cst_68 [1] : vector<8x32xf32> to vector<8xf32>
    %152 = vector.shape_cast %151 : vector<8xf32> to vector<8x1xf32>
    %cst_69 = arith.constant 3.200000e+01 : f32
    %153 = vector.broadcast %cst_69 : f32 to vector<8x1xf32>
    %154 = arith.divf %152, %153 : vector<8x1xf32>
    %155 = vector.broadcast %154 : vector<8x1xf32> to vector<8x32xf32>
    %156 = arith.subf %148, %155 : vector<8x32xf32>
    %157 = arith.mulf %156, %156 : vector<8x32xf32>
    %cst_70 = arith.constant dense<0.000000e+00> : vector<8xf32>
    %158 = vector.multi_reduction <add>, %157, %cst_70 [1] : vector<8x32xf32> to vector<8xf32>
    %159 = vector.shape_cast %158 : vector<8xf32> to vector<8x1xf32>
    %cst_71 = arith.constant 3.200000e+01 : f32
    %160 = vector.broadcast %cst_71 : f32 to vector<8x1xf32>
    %161 = arith.divf %159, %160 : vector<8x1xf32>
    %cst_72 = arith.constant 9.99999974E-6 : f32
    %162 = vector.broadcast %cst_72 : f32 to vector<8x1xf32>
    %163 = arith.addf %161, %162 : vector<8x1xf32>
    %164 = math.rsqrt %163 : vector<8x1xf32>
    %165 = vector.broadcast %164 : vector<8x1xf32> to vector<8x32xf32>
    %166 = arith.mulf %156, %165 : vector<8x32xf32>
    %167 = vector.broadcast %149 : vector<1x32xf32> to vector<8x32xf32>
    %168 = arith.mulf %166, %167 : vector<8x32xf32>
    %169 = vector.broadcast %150 : vector<1x32xf32> to vector<8x32xf32>
    %170 = arith.addf %168, %169 : vector<8x32xf32>
    %c0_73 = arith.constant 0 : index
    %c0_74 = arith.constant 0 : index
    %c0_75 = arith.constant 0 : index
    %171 = vector.load %arg18[%c0_73, %c0_74, %c0_75] : memref<1x8x32xf32, #tpu.memory_space<vmem>>, vector<1x8x32xf32>
    %172 = vector.shape_cast %171 : vector<1x8x32xf32> to vector<8x32xf32>
    %173 = vector.shape_cast %170 : vector<8x32xf32> to vector<1x8x32xf32>
    tpu.vector_store %arg18[%c0_73, %c0_74, %c0_75], %173 {strides = array<i32>} : memref<1x8x32xf32, #tpu.memory_space<vmem>>, vector<1x8x32xf32>,
    return
  }
  func.func @transform_0(%arg0: i32, %arg1: i32) -> (i32, i32, i32) {
    %c0_i32 = arith.constant 0 : i32
    %c0_i32_0 = arith.constant 0 : i32
    return %arg0, %arg1, %c0_i32 : i32, i32, i32
  }
  func.func @transform_1(%arg0: i32, %arg1: i32) -> (i32, i32, i32) {
    %c0_i32 = arith.constant 0 : i32
    %c0_i32_0 = arith.constant 0 : i32
    %c0_i32_1 = arith.constant 0 : i32
    return %arg0, %c0_i32, %c0_i32_0 : i32, i32, i32
  }
  func.func @transform_2(%arg0: i32, %arg1: i32) -> (i32, i32) {
    %c0_i32 = arith.constant 0 : i32
    %c0_i32_0 = arith.constant 0 : i32
    %c0_i32_1 = arith.constant 0 : i32
    return %c0_i32, %c0_i32_0 : i32, i32
  }
  func.func @transform_3(%arg0: i32, %arg1: i32) -> (i32, i32) {
    %c0_i32 = arith.constant 0 : i32
    %c0_i32_0 = arith.constant 0 : i32
    %c0_i32_1 = arith.constant 0 : i32
    return %c0_i32, %c0_i32_0 : i32, i32
  }
  func.func @transform_4(%arg0: i32, %arg1: i32) -> (i32, i32) {
    %c0_i32 = arith.constant 0 : i32
    %c0_i32_0 = arith.constant 0 : i32
    %c0_i32_1 = arith.constant 0 : i32
    return %c0_i32, %c0_i32_0 : i32, i32
  }
  func.func @transform_5(%arg0: i32, %arg1: i32) -> (i32, i32) {
    %c0_i32 = arith.constant 0 : i32
    %c0_i32_0 = arith.constant 0 : i32
    %c0_i32_1 = arith.constant 0 : i32
    return %c0_i32, %c0_i32_0 : i32, i32
  }
  func.func @transform_6(%arg0: i32, %arg1: i32) -> (i32, i32) {
    %c0_i32 = arith.constant 0 : i32
    %c0_i32_0 = arith.constant 0 : i32
    %c0_i32_1 = arith.constant 0 : i32
    return %c0_i32, %c0_i32_0 : i32, i32
  }
  func.func @transform_7(%arg0: i32, %arg1: i32) -> (i32, i32) {
    %c0_i32 = arith.constant 0 : i32
    %c0_i32_0 = arith.constant 0 : i32
    %c0_i32_1 = arith.constant 0 : i32
    return %c0_i32, %c0_i32_0 : i32, i32
  }
  func.func @transform_8(%arg0: i32, %arg1: i32) -> (i32, i32) {
    %c0_i32 = arith.constant 0 : i32
    %c0_i32_0 = arith.constant 0 : i32
    %c0_i32_1 = arith.constant 0 : i32
    return %c0_i32, %c0_i32_0 : i32, i32
  }
  func.func @transform_9(%arg0: i32, %arg1: i32) -> (i32, i32) {
    %c0_i32 = arith.constant 0 : i32
    %c0_i32_0 = arith.constant 0 : i32
    %c0_i32_1 = arith.constant 0 : i32
    return %c0_i32, %c0_i32_0 : i32, i32
  }
  func.func @transform_10(%arg0: i32, %arg1: i32) -> (i32, i32) {
    %c0_i32 = arith.constant 0 : i32
    %c0_i32_0 = arith.constant 0 : i32
    %c0_i32_1 = arith.constant 0 : i32
    return %c0_i32, %c0_i32_0 : i32, i32
  }
  func.func @transform_11(%arg0: i32, %arg1: i32) -> (i32, i32) {
    %c0_i32 = arith.constant 0 : i32
    %c0_i32_0 = arith.constant 0 : i32
    %c0_i32_1 = arith.constant 0 : i32
    return %c0_i32, %c0_i32_0 : i32, i32
  }
  func.func @transform_12(%arg0: i32, %arg1: i32) -> (i32, i32) {
    %c0_i32 = arith.constant 0 : i32
    %c0_i32_0 = arith.constant 0 : i32
    %c0_i32_1 = arith.constant 0 : i32
    return %c0_i32, %c0_i32_0 : i32, i32
  }
  func.func @transform_13(%arg0: i32, %arg1: i32) -> (i32, i32) {
    %c0_i32 = arith.constant 0 : i32
    %c0_i32_0 = arith.constant 0 : i32
    %c0_i32_1 = arith.constant 0 : i32
    return %c0_i32, %c0_i32_0 : i32, i32
  }
  func.func @transform_14(%arg0: i32, %arg1: i32) -> (i32, i32) {
    %c0_i32 = arith.constant 0 : i32
    %c0_i32_0 = arith.constant 0 : i32
    %c0_i32_1 = arith.constant 0 : i32
    return %c0_i32, %c0_i32_0 : i32, i32
  }
  func.func @transform_15(%arg0: i32, %arg1: i32) -> (i32, i32) {
    %c0_i32 = arith.constant 0 : i32
    %c0_i32_0 = arith.constant 0 : i32
    %c0_i32_1 = arith.constant 0 : i32
    return %c0_i32, %c0_i32_0 : i32, i32
  }
  func.func @transform_16(%arg0: i32, %arg1: i32) -> (i32, i32, i32) {
    %c0_i32 = arith.constant 0 : i32
    %c0_i32_0 = arith.constant 0 : i32
    return %arg0, %arg1, %c0_i32 : i32, i32, i32
  }
}

module attributes {stable_mosaic.version = 11 : i64} {
  func.func @transformer_layer_kernel(%arg0: i32, %arg1: i32, %arg2: memref<1x8x32xf32, #tpu.memory_space<vmem>>, %arg3: memref<1x8x32xf32, #tpu.memory_space<vmem>>, %arg4: memref<32x32xbf16, #tpu.memory_space<vmem>>, %arg5: memref<32x64xbf16, #tpu.memory_space<vmem>>, %arg6: memref<1x32xf32, #tpu.memory_space<vmem>>, %arg7: memref<1x64xf32, #tpu.memory_space<vmem>>, %arg8: memref<32x32xbf16, #tpu.memory_space<vmem>>, %arg9: memref<1x32xf32, #tpu.memory_space<vmem>>, %arg10: memref<1x32xf32, #tpu.memory_space<vmem>>, %arg11: memref<1x32xf32, #tpu.memory_space<vmem>>, %arg12: memref<32x64xbf16, #tpu.memory_space<vmem>>, %arg13: memref<1x64xf32, #tpu.memory_space<vmem>>, %arg14: memref<64x32xbf16, #tpu.memory_space<vmem>>, %arg15: memref<1x32xf32, #tpu.memory_space<vmem>>, %arg16: memref<1x32xf32, #tpu.memory_space<vmem>>, %arg17: memref<1x32xf32, #tpu.memory_space<vmem>>, %arg18: memref<1x8x32xf32, #tpu.memory_space<vmem>>, %arg19: memref<8x32xf32, #tpu.memory_space<vmem>>) attributes {dimension_semantics = [#tpu.dimension_semantics<parallel>, #tpu.dimension_semantics<parallel>], iteration_bounds = array<i64: 2, 1>, scalar_prefetch = 0 : i64, scratch_operands = 1 : i64, tpu.core_type = #tpu.core_type<tc>, window_params = [{transform_indices = @transform_0, window_bounds = array<i64: 1, 8, 32>}, {transform_indices = @transform_1, window_bounds = array<i64: 1, 8, 32>}, {pipeline_mode = #tpu.pipeline_mode<synchronous>, transform_indices = @transform_2, window_bounds = array<i64: 32, 32>}, {pipeline_mode = #tpu.pipeline_mode<synchronous>, transform_indices = @transform_3, window_bounds = array<i64: 32, 64>}, {pipeline_mode = #tpu.pipeline_mode<synchronous>, transform_indices = @transform_4, window_bounds = array<i64: 1, 32>}, {pipeline_mode = #tpu.pipeline_mode<synchronous>, transform_indices = @transform_5, window_bounds = array<i64: 1, 64>}, {pipeline_mode = #tpu.pipeline_mode<synchronous>, transform_indices = @transform_6, window_bounds = array<i64: 32, 32>}, {pipeline_mode = #tpu.pipeline_mode<synchronous>, transform_indices = @transform_7, window_bounds = array<i64: 1, 32>}, {pipeline_mode = #tpu.pipeline_mode<synchronous>, transform_indices = @transform_8, window_bounds = array<i64: 1, 32>}, {pipeline_mode = #tpu.pipeline_mode<synchronous>, transform_indices = @transform_9, window_bounds = array<i64: 1, 32>}, {pipeline_mode = #tpu.pipeline_mode<synchronous>, transform_indices = @transform_10, window_bounds = array<i64: 32, 64>}, {pipeline_mode = #tpu.pipeline_mode<synchronous>, transform_indices = @transform_11, window_bounds = array<i64: 1, 64>}, {pipeline_mode = #tpu.pipeline_mode<synchronous>, transform_indices = @transform_12, window_bounds = array<i64: 64, 32>}, {pipeline_mode = #tpu.pipeline_mode<synchronous>, transform_indices = @transform_13, window_bounds = array<i64: 1, 32>}, {pipeline_mode = #tpu.pipeline_mode<synchronous>, transform_indices = @transform_14, window_bounds = array<i64: 1, 32>}, {pipeline_mode = #tpu.pipeline_mode<synchronous>, transform_indices = @transform_15, window_bounds = array<i64: 1, 32>}, {transform_indices = @transform_16, window_bounds = array<i64: 1, 8, 32>}]} {
    %c0 = arith.constant 0 : index
    %c0_0 = arith.constant 0 : index
    %c0_1 = arith.constant 0 : index
    %0 = vector.load %arg2[%c0, %c0_0, %c0_1] : memref<1x8x32xf32, #tpu.memory_space<vmem>>, vector<1x8x32xf32>
    %1 = vector.shape_cast %0 : vector<1x8x32xf32> to vector<8x32xf32>
    %c0_2 = arith.constant 0 : index
    %c0_3 = arith.constant 0 : index
    %c0_4 = arith.constant 0 : index
    %2 = vector.load %arg3[%c0_2, %c0_3, %c0_4] : memref<1x8x32xf32, #tpu.memory_space<vmem>>, vector<1x8x32xf32>
    %3 = vector.shape_cast %2 : vector<1x8x32xf32> to vector<8x32xf32>
    %4 = arith.truncf %1 : vector<8x32xf32> to vector<8x32xbf16>
    %5 = arith.truncf %3 : vector<8x32xf32> to vector<8x32xbf16>
    %c0_5 = arith.constant 0 : index
    %c0_6 = arith.constant 0 : index
    %6 = vector.load %arg4[%c0_5, %c0_6] : memref<32x32xbf16, #tpu.memory_space<vmem>>, vector<32x32xbf16>
    %cst = arith.constant dense<0.000000e+00> : vector<8x32xf32>
    %7 = tpu.matmul %4, %6, %cst {dimension_numbers = #tpu.dot_dimension_numbers<[1], [0], [0], [1], [0, 0, 1, 1], [], []>} : vector<8x32xbf16>, vector<32x32xbf16>, vector<8x32xf32> -> vector<8x32xf32>
    %c0_7 = arith.constant 0 : index
    %c0_8 = arith.constant 0 : index
    %8 = vector.load %arg6[%c0_7, %c0_8] : memref<1x32xf32, #tpu.memory_space<vmem>>, vector<1x32xf32>
    %9 = vector.broadcast %8 : vector<1x32xf32> to vector<8x32xf32>
    %10 = arith.addf %7, %9 : vector<8x32xf32>
    %c0_9 = arith.constant 0 : index
    %c0_10 = arith.constant 0 : index
    %11 = vector.load %arg5[%c0_9, %c0_10] : memref<32x64xbf16, #tpu.memory_space<vmem>>, vector<32x64xbf16>
    %cst_11 = arith.constant dense<0.000000e+00> : vector<8x64xf32>
    %12 = tpu.matmul %5, %11, %cst_11 {dimension_numbers = #tpu.dot_dimension_numbers<[1], [0], [0], [1], [0, 0, 1, 1], [], []>} : vector<8x32xbf16>, vector<32x64xbf16>, vector<8x64xf32> -> vector<8x64xf32>
    %c0_12 = arith.constant 0 : index
    %c0_13 = arith.constant 0 : index
    %13 = vector.load %arg7[%c0_12, %c0_13] : memref<1x64xf32, #tpu.memory_space<vmem>>, vector<1x64xf32>
    %14 = vector.broadcast %13 : vector<1x64xf32> to vector<8x64xf32>
    %15 = arith.addf %12, %14 : vector<8x64xf32>
    %16 = vector.extract_strided_slice %15 {offsets = [0, 0], sizes = [8, 32], strides = [1, 1]} : vector<8x64xf32> to vector<8x32xf32>
    %17 = vector.extract_strided_slice %15 {offsets = [0, 32], sizes = [8, 32], strides = [1, 1]} : vector<8x64xf32> to vector<8x32xf32>
    %18 = vector.extract_strided_slice %10 {offsets = [0, 0], sizes = [8, 8], strides = [1, 1]} : vector<8x32xf32> to vector<8x8xf32>
    %19 = arith.truncf %18 : vector<8x8xf32> to vector<8x8xbf16>
    %20 = vector.extract_strided_slice %16 {offsets = [0, 0], sizes = [8, 8], strides = [1, 1]} : vector<8x32xf32> to vector<8x8xf32>
    %21 = arith.truncf %20 : vector<8x8xf32> to vector<8x8xbf16>
    %22 = vector.extract_strided_slice %17 {offsets = [0, 0], sizes = [8, 8], strides = [1, 1]} : vector<8x32xf32> to vector<8x8xf32>
    %23 = arith.truncf %22 : vector<8x8xf32> to vector<8x8xbf16>
    %cst_14 = arith.constant dense<0.000000e+00> : vector<8x8xf32>
    %24 = tpu.matmul %19, %21, %cst_14 {dimension_numbers = #tpu.dot_dimension_numbers<[1], [1], [0], [0], [0, 0, 1, 0], [], []>} : vector<8x8xbf16>, vector<8x8xbf16>, vector<8x8xf32> -> vector<8x8xf32>
    %cst_15 = arith.constant dense<0xFF800000> : vector<8xf32>
    %25 = vector.multi_reduction <maximumf>, %24, %cst_15 [1] : vector<8x8xf32> to vector<8xf32>
    %26 = vector.shape_cast %25 : vector<8xf32> to vector<8x1xf32>
    %27 = vector.broadcast %26 : vector<8x1xf32> to vector<8x8xf32>
    %28 = arith.subf %24, %27 : vector<8x8xf32>
    %29 = math.exp %28 : vector<8x8xf32>
    %cst_16 = arith.constant dense<0.000000e+00> : vector<8xf32>
    %30 = vector.multi_reduction <add>, %29, %cst_16 [1] : vector<8x8xf32> to vector<8xf32>
    %31 = vector.shape_cast %30 : vector<8xf32> to vector<8x1xf32>
    %32 = tpu.reciprocal %31 {approx = true} : vector<8x1xf32> -> vector<8x1xf32>
    %33 = vector.broadcast %32 : vector<8x1xf32> to vector<8x8xf32>
    %34 = arith.mulf %29, %33 : vector<8x8xf32>
    %35 = arith.truncf %34 : vector<8x8xf32> to vector<8x8xbf16>
    %cst_17 = arith.constant dense<0.000000e+00> : vector<8x8xf32>
    %36 = tpu.matmul %35, %23, %cst_17 {dimension_numbers = #tpu.dot_dimension_numbers<[1], [0], [0], [1], [0, 0, 1, 1], [], []>} : vector<8x8xbf16>, vector<8x8xbf16>, vector<8x8xf32> -> vector<8x8xf32>
    %c0_18 = arith.constant 0 : index
    %c0_19 = arith.constant 0 : index
    %37 = vector.load %arg19[%c0_18, %c0_19] : memref<8x32xf32, #tpu.memory_space<vmem>>, vector<8x8xf32>
    tpu.vector_store %arg19[%c0_18, %c0_19], %36 {strides = array<i32>} : memref<8x32xf32, #tpu.memory_space<vmem>>, vector<8x8xf32>,
    %38 = vector.extract_strided_slice %10 {offsets = [0, 8], sizes = [8, 8], strides = [1, 1]} : vector<8x32xf32> to vector<8x8xf32>
    %39 = arith.truncf %38 : vector<8x8xf32> to vector<8x8xbf16>
    %40 = vector.extract_strided_slice %16 {offsets = [0, 8], sizes = [8, 8], strides = [1, 1]} : vector<8x32xf32> to vector<8x8xf32>
    %41 = arith.truncf %40 : vector<8x8xf32> to vector<8x8xbf16>
    %42 = vector.extract_strided_slice %17 {offsets = [0, 8], sizes = [8, 8], strides = [1, 1]} : vector<8x32xf32> to vector<8x8xf32>
    %43 = arith.truncf %42 : vector<8x8xf32> to vector<8x8xbf16>
    %cst_20 = arith.constant dense<0.000000e+00> : vector<8x8xf32>
    %44 = tpu.matmul %39, %41, %cst_20 {dimension_numbers = #tpu.dot_dimension_numbers<[1], [1], [0], [0], [0, 0, 1, 0], [], []>} : vector<8x8xbf16>, vector<8x8xbf16>, vector<8x8xf32> -> vector<8x8xf32>
    %cst_21 = arith.constant dense<0xFF800000> : vector<8xf32>
    %45 = vector.multi_reduction <maximumf>, %44, %cst_21 [1] : vector<8x8xf32> to vector<8xf32>
    %46 = vector.shape_cast %45 : vector<8xf32> to vector<8x1xf32>
    %47 = vector.broadcast %46 : vector<8x1xf32> to vector<8x8xf32>
    %48 = arith.subf %44, %47 : vector<8x8xf32>
    %49 = math.exp %48 : vector<8x8xf32>
    %cst_22 = arith.constant dense<0.000000e+00> : vector<8xf32>
    %50 = vector.multi_reduction <add>, %49, %cst_22 [1] : vector<8x8xf32> to vector<8xf32>
    %51 = vector.shape_cast %50 : vector<8xf32> to vector<8x1xf32>
    %52 = tpu.reciprocal %51 {approx = true} : vector<8x1xf32> -> vector<8x1xf32>
    %53 = vector.broadcast %52 : vector<8x1xf32> to vector<8x8xf32>
    %54 = arith.mulf %49, %53 : vector<8x8xf32>
    %55 = arith.truncf %54 : vector<8x8xf32> to vector<8x8xbf16>
    %cst_23 = arith.constant dense<0.000000e+00> : vector<8x8xf32>
    %56 = tpu.matmul %55, %43, %cst_23 {dimension_numbers = #tpu.dot_dimension_numbers<[1], [0], [0], [1], [0, 0, 1, 1], [], []>} : vector<8x8xbf16>, vector<8x8xbf16>, vector<8x8xf32> -> vector<8x8xf32>
    %c0_24 = arith.constant 0 : index
    %c8 = arith.constant 8 : index
    %57 = vector.load %arg19[%c0_24, %c8] : memref<8x32xf32, #tpu.memory_space<vmem>>, vector<8x8xf32>
    tpu.vector_store %arg19[%c0_24, %c8], %56 {strides = array<i32>} : memref<8x32xf32, #tpu.memory_space<vmem>>, vector<8x8xf32>,
    %58 = vector.extract_strided_slice %10 {offsets = [0, 16], sizes = [8, 8], strides = [1, 1]} : vector<8x32xf32> to vector<8x8xf32>
    %59 = arith.truncf %58 : vector<8x8xf32> to vector<8x8xbf16>
    %60 = vector.extract_strided_slice %16 {offsets = [0, 16], sizes = [8, 8], strides = [1, 1]} : vector<8x32xf32> to vector<8x8xf32>
    %61 = arith.truncf %60 : vector<8x8xf32> to vector<8x8xbf16>
    %62 = vector.extract_strided_slice %17 {offsets = [0, 16], sizes = [8, 8], strides = [1, 1]} : vector<8x32xf32> to vector<8x8xf32>
    %63 = arith.truncf %62 : vector<8x8xf32> to vector<8x8xbf16>
    %cst_25 = arith.constant dense<0.000000e+00> : vector<8x8xf32>
    %64 = tpu.matmul %59, %61, %cst_25 {dimension_numbers = #tpu.dot_dimension_numbers<[1], [1], [0], [0], [0, 0, 1, 0], [], []>} : vector<8x8xbf16>, vector<8x8xbf16>, vector<8x8xf32> -> vector<8x8xf32>
    %cst_26 = arith.constant dense<0xFF800000> : vector<8xf32>
    %65 = vector.multi_reduction <maximumf>, %64, %cst_26 [1] : vector<8x8xf32> to vector<8xf32>
    %66 = vector.shape_cast %65 : vector<8xf32> to vector<8x1xf32>
    %67 = vector.broadcast %66 : vector<8x1xf32> to vector<8x8xf32>
    %68 = arith.subf %64, %67 : vector<8x8xf32>
    %69 = math.exp %68 : vector<8x8xf32>
    %cst_27 = arith.constant dense<0.000000e+00> : vector<8xf32>
    %70 = vector.multi_reduction <add>, %69, %cst_27 [1] : vector<8x8xf32> to vector<8xf32>
    %71 = vector.shape_cast %70 : vector<8xf32> to vector<8x1xf32>
    %72 = tpu.reciprocal %71 {approx = true} : vector<8x1xf32> -> vector<8x1xf32>
    %73 = vector.broadcast %72 : vector<8x1xf32> to vector<8x8xf32>
    %74 = arith.mulf %69, %73 : vector<8x8xf32>
    %75 = arith.truncf %74 : vector<8x8xf32> to vector<8x8xbf16>
    %cst_28 = arith.constant dense<0.000000e+00> : vector<8x8xf32>
    %76 = tpu.matmul %75, %63, %cst_28 {dimension_numbers = #tpu.dot_dimension_numbers<[1], [0], [0], [1], [0, 0, 1, 1], [], []>} : vector<8x8xbf16>, vector<8x8xbf16>, vector<8x8xf32> -> vector<8x8xf32>
    %c0_29 = arith.constant 0 : index
    %c16 = arith.constant 16 : index
    %77 = vector.load %arg19[%c0_29, %c16] : memref<8x32xf32, #tpu.memory_space<vmem>>, vector<8x8xf32>
    tpu.vector_store %arg19[%c0_29, %c16], %76 {strides = array<i32>} : memref<8x32xf32, #tpu.memory_space<vmem>>, vector<8x8xf32>,
    %78 = vector.extract_strided_slice %10 {offsets = [0, 24], sizes = [8, 8], strides = [1, 1]} : vector<8x32xf32> to vector<8x8xf32>
    %79 = arith.truncf %78 : vector<8x8xf32> to vector<8x8xbf16>
    %80 = vector.extract_strided_slice %16 {offsets = [0, 24], sizes = [8, 8], strides = [1, 1]} : vector<8x32xf32> to vector<8x8xf32>
    %81 = arith.truncf %80 : vector<8x8xf32> to vector<8x8xbf16>
    %82 = vector.extract_strided_slice %17 {offsets = [0, 24], sizes = [8, 8], strides = [1, 1]} : vector<8x32xf32> to vector<8x8xf32>
    %83 = arith.truncf %82 : vector<8x8xf32> to vector<8x8xbf16>
    %cst_30 = arith.constant dense<0.000000e+00> : vector<8x8xf32>
    %84 = tpu.matmul %79, %81, %cst_30 {dimension_numbers = #tpu.dot_dimension_numbers<[1], [1], [0], [0], [0, 0, 1, 0], [], []>} : vector<8x8xbf16>, vector<8x8xbf16>, vector<8x8xf32> -> vector<8x8xf32>
    %cst_31 = arith.constant dense<0xFF800000> : vector<8xf32>
    %85 = vector.multi_reduction <maximumf>, %84, %cst_31 [1] : vector<8x8xf32> to vector<8xf32>
    %86 = vector.shape_cast %85 : vector<8xf32> to vector<8x1xf32>
    %87 = vector.broadcast %86 : vector<8x1xf32> to vector<8x8xf32>
    %88 = arith.subf %84, %87 : vector<8x8xf32>
    %89 = math.exp %88 : vector<8x8xf32>
    %cst_32 = arith.constant dense<0.000000e+00> : vector<8xf32>
    %90 = vector.multi_reduction <add>, %89, %cst_32 [1] : vector<8x8xf32> to vector<8xf32>
    %91 = vector.shape_cast %90 : vector<8xf32> to vector<8x1xf32>
    %92 = tpu.reciprocal %91 {approx = true} : vector<8x1xf32> -> vector<8x1xf32>
    %93 = vector.broadcast %92 : vector<8x1xf32> to vector<8x8xf32>
    %94 = arith.mulf %89, %93 : vector<8x8xf32>
    %95 = arith.truncf %94 : vector<8x8xf32> to vector<8x8xbf16>
    %cst_33 = arith.constant dense<0.000000e+00> : vector<8x8xf32>
    %96 = tpu.matmul %95, %83, %cst_33 {dimension_numbers = #tpu.dot_dimension_numbers<[1], [0], [0], [1], [0, 0, 1, 1], [], []>} : vector<8x8xbf16>, vector<8x8xbf16>, vector<8x8xf32> -> vector<8x8xf32>
    %c0_34 = arith.constant 0 : index
    %c24 = arith.constant 24 : index
    %97 = vector.load %arg19[%c0_34, %c24] : memref<8x32xf32, #tpu.memory_space<vmem>>, vector<8x8xf32>
    tpu.vector_store %arg19[%c0_34, %c24], %96 {strides = array<i32>} : memref<8x32xf32, #tpu.memory_space<vmem>>, vector<8x8xf32>,
    %c0_35 = arith.constant 0 : index
    %c0_36 = arith.constant 0 : index
    %98 = vector.load %arg19[%c0_35, %c0_36] : memref<8x32xf32, #tpu.memory_space<vmem>>, vector<8x32xf32>
    %99 = arith.truncf %98 : vector<8x32xf32> to vector<8x32xbf16>
    %c0_37 = arith.constant 0 : index
    %c0_38 = arith.constant 0 : index
    %100 = vector.load %arg8[%c0_37, %c0_38] : memref<32x32xbf16, #tpu.memory_space<vmem>>, vector<32x32xbf16>
    %cst_39 = arith.constant dense<0.000000e+00> : vector<8x32xf32>
    %101 = tpu.matmul %99, %100, %cst_39 {dimension_numbers = #tpu.dot_dimension_numbers<[1], [0], [0], [1], [0, 0, 1, 1], [], []>} : vector<8x32xbf16>, vector<32x32xbf16>, vector<8x32xf32> -> vector<8x32xf32>
    %c0_40 = arith.constant 0 : index
    %c0_41 = arith.constant 0 : index
    %102 = vector.load %arg9[%c0_40, %c0_41] : memref<1x32xf32, #tpu.memory_space<vmem>>, vector<1x32xf32>
    %103 = vector.broadcast %102 : vector<1x32xf32> to vector<8x32xf32>
    %104 = arith.addf %101, %103 : vector<8x32xf32>
    %105 = arith.addf %1, %104 : vector<8x32xf32>
    %c0_42 = arith.constant 0 : index
    %c0_43 = arith.constant 0 : index
    %106 = vector.load %arg10[%c0_42, %c0_43] : memref<1x32xf32, #tpu.memory_space<vmem>>, vector<1x32xf32>
    %c0_44 = arith.constant 0 : index
    %c0_45 = arith.constant 0 : index
    %107 = vector.load %arg11[%c0_44, %c0_45] : memref<1x32xf32, #tpu.memory_space<vmem>>, vector<1x32xf32>
    %cst_46 = arith.constant dense<0.000000e+00> : vector<8xf32>
    %108 = vector.multi_reduction <add>, %105, %cst_46 [1] : vector<8x32xf32> to vector<8xf32>
    %109 = vector.shape_cast %108 : vector<8xf32> to vector<8x1xf32>
    %cst_47 = arith.constant 3.200000e+01 : f32
    %110 = vector.broadcast %cst_47 : f32 to vector<8x1xf32>
    %111 = arith.divf %109, %110 : vector<8x1xf32>
    %112 = vector.broadcast %111 : vector<8x1xf32> to vector<8x32xf32>
    %113 = arith.subf %105, %112 : vector<8x32xf32>
    %114 = arith.mulf %113, %113 : vector<8x32xf32>
    %cst_48 = arith.constant dense<0.000000e+00> : vector<8xf32>
    %115 = vector.multi_reduction <add>, %114, %cst_48 [1] : vector<8x32xf32> to vector<8xf32>
    %116 = vector.shape_cast %115 : vector<8xf32> to vector<8x1xf32>
    %cst_49 = arith.constant 3.200000e+01 : f32
    %117 = vector.broadcast %cst_49 : f32 to vector<8x1xf32>
    %118 = arith.divf %116, %117 : vector<8x1xf32>
    %cst_50 = arith.constant 9.99999974E-6 : f32
    %119 = vector.broadcast %cst_50 : f32 to vector<8x1xf32>
    %120 = arith.addf %118, %119 : vector<8x1xf32>
    %121 = math.rsqrt %120 : vector<8x1xf32>
    %122 = vector.broadcast %121 : vector<8x1xf32> to vector<8x32xf32>
    %123 = arith.mulf %113, %122 : vector<8x32xf32>
    %124 = vector.broadcast %106 : vector<1x32xf32> to vector<8x32xf32>
    %125 = arith.mulf %123, %124 : vector<8x32xf32>
    %126 = vector.broadcast %107 : vector<1x32xf32> to vector<8x32xf32>
    %127 = arith.addf %125, %126 : vector<8x32xf32>
    %128 = arith.truncf %127 : vector<8x32xf32> to vector<8x32xbf16>
    %c0_51 = arith.constant 0 : index
    %c0_52 = arith.constant 0 : index
    %129 = vector.load %arg12[%c0_51, %c0_52] : memref<32x64xbf16, #tpu.memory_space<vmem>>, vector<32x64xbf16>
    %cst_53 = arith.constant dense<0.000000e+00> : vector<8x64xf32>
    %130 = tpu.matmul %128, %129, %cst_53 {dimension_numbers = #tpu.dot_dimension_numbers<[1], [0], [0], [1], [0, 0, 1, 1], [], []>} : vector<8x32xbf16>, vector<32x64xbf16>, vector<8x64xf32> -> vector<8x64xf32>
    %c0_54 = arith.constant 0 : index
    %c0_55 = arith.constant 0 : index
    %131 = vector.load %arg13[%c0_54, %c0_55] : memref<1x64xf32, #tpu.memory_space<vmem>>, vector<1x64xf32>
    %132 = vector.broadcast %131 : vector<1x64xf32> to vector<8x64xf32>
    %133 = arith.addf %130, %132 : vector<8x64xf32>
    %cst_56 = arith.constant 5.000000e-01 : f32
    %134 = vector.broadcast %cst_56 : f32 to vector<8x64xf32>
    %135 = arith.mulf %134, %133 : vector<8x64xf32>
    %cst_57 = arith.constant 0.707106769 : f32
    %136 = vector.broadcast %cst_57 : f32 to vector<8x64xf32>
    %137 = arith.mulf %133, %136 : vector<8x64xf32>
    %138 = math.erf %137 : vector<8x64xf32>
    %cst_58 = arith.constant 1.000000e+00 : f32
    %139 = vector.broadcast %cst_58 : f32 to vector<8x64xf32>
    %140 = arith.addf %139, %138 : vector<8x64xf32>
    %141 = arith.mulf %135, %140 : vector<8x64xf32>
    %142 = arith.truncf %141 : vector<8x64xf32> to vector<8x64xbf16>
    %c0_59 = arith.constant 0 : index
    %c0_60 = arith.constant 0 : index
    %143 = vector.load %arg14[%c0_59, %c0_60] : memref<64x32xbf16, #tpu.memory_space<vmem>>, vector<64x32xbf16>
    %cst_61 = arith.constant dense<0.000000e+00> : vector<8x32xf32>
    %144 = tpu.matmul %142, %143, %cst_61 {dimension_numbers = #tpu.dot_dimension_numbers<[1], [0], [0], [1], [0, 0, 1, 1], [], []>} : vector<8x64xbf16>, vector<64x32xbf16>, vector<8x32xf32> -> vector<8x32xf32>
    %c0_62 = arith.constant 0 : index
    %c0_63 = arith.constant 0 : index
    %145 = vector.load %arg15[%c0_62, %c0_63] : memref<1x32xf32, #tpu.memory_space<vmem>>, vector<1x32xf32>
    %146 = vector.broadcast %145 : vector<1x32xf32> to vector<8x32xf32>
    %147 = arith.addf %144, %146 : vector<8x32xf32>
    %148 = arith.addf %147, %127 : vector<8x32xf32>
    %c0_64 = arith.constant 0 : index
    %c0_65 = arith.constant 0 : index
    %149 = vector.load %arg16[%c0_64, %c0_65] : memref<1x32xf32, #tpu.memory_space<vmem>>, vector<1x32xf32>
    %c0_66 = arith.constant 0 : index
    %c0_67 = arith.constant 0 : index
    %150 = vector.load %arg17[%c0_66, %c0_67] : memref<1x32xf32, #tpu.memory_space<vmem>>, vector<1x32xf32>
    %cst_68 = arith.constant dense<0.000000e+00> : vector<8xf32>
    %151 = vector.multi_reduction <add>, %148, %cst_68 [1] : vector<8x32xf32> to vector<8xf32>
    %152 = vector.shape_cast %151 : vector<8xf32> to vector<8x1xf32>
    %cst_69 = arith.constant 3.200000e+01 : f32
    %153 = vector.broadcast %cst_69 : f32 to vector<8x1xf32>
    %154 = arith.divf %152, %153 : vector<8x1xf32>
    %155 = vector.broadcast %154 : vector<8x1xf32> to vector<8x32xf32>
    %156 = arith.subf %148, %155 : vector<8x32xf32>
    %157 = arith.mulf %156, %156 : vector<8x32xf32>
    %cst_70 = arith.constant dense<0.000000e+00> : vector<8xf32>
    %158 = vector.multi_reduction <add>, %157, %cst_70 [1] : vector<8x32xf32> to vector<8xf32>
    %159 = vector.shape_cast %158 : vector<8xf32> to vector<8x1xf32>
    %cst_71 = arith.constant 3.200000e+01 : f32
    %160 = vector.broadcast %cst_71 : f32 to vector<8x1xf32>
    %161 = arith.divf %159, %160 : vector<8x1xf32>
    %cst_72 = arith.constant 9.99999974E-6 : f32
    %162 = vector.broadcast %cst_72 : f32 to vector<8x1xf32>
    %163 = arith.addf %161, %162 : vector<8x1xf32>
    %164 = math.rsqrt %163 : vector<8x1xf32>
    %165 = vector.broadcast %164 : vector<8x1xf32> to vector<8x32xf32>
    %166 = arith.mulf %156, %165 : vector<8x32xf32>
    %167 = vector.broadcast %149 : vector<1x32xf32> to vector<8x32xf32>
    %168 = arith.mulf %166, %167 : vector<8x32xf32>
    %169 = vector.broadcast %150 : vector<1x32xf32> to vector<8x32xf32>
    %170 = arith.addf %168, %169 : vector<8x32xf32>
    %c0_73 = arith.constant 0 : index
    %c0_74 = arith.constant 0 : index
    %c0_75 = arith.constant 0 : index
    %171 = vector.load %arg18[%c0_73, %c0_74, %c0_75] : memref<1x8x32xf32, #tpu.memory_space<vmem>>, vector<1x8x32xf32>
    %172 = vector.shape_cast %171 : vector<1x8x32xf32> to vector<8x32xf32>
    %173 = vector.shape_cast %170 : vector<8x32xf32> to vector<1x8x32xf32>
    tpu.vector_store %arg18[%c0_73, %c0_74, %c0_75], %173 {strides = array<i32>} : memref<1x8x32xf32, #tpu.memory_space<vmem>>, vector<1x8x32xf32>,
    return
  }
  func.func @transform_0(%arg0: i32, %arg1: i32) -> (i32, i32, i32) {
    %c0_i32 = arith.constant 0 : i32
    %c0_i32_0 = arith.constant 0 : i32
    return %arg0, %arg1, %c0_i32 : i32, i32, i32
  }
  func.func @transform_1(%arg0: i32, %arg1: i32) -> (i32, i32, i32) {
    %c0_i32 = arith.constant 0 : i32
    %c0_i32_0 = arith.constant 0 : i32
    %c0_i32_1 = arith.constant 0 : i32
    return %arg0, %c0_i32, %c0_i32_0 : i32, i32, i32
  }
  func.func @transform_2(%arg0: i32, %arg1: i32) -> (i32, i32) {
    %c0_i32 = arith.constant 0 : i32
    %c0_i32_0 = arith.constant 0 : i32
    %c0_i32_1 = arith.constant 0 : i32
    return %c0_i32, %c0_i32_0 : i32, i32
  }
  func.func @transform_3(%arg0: i32, %arg1: i32) -> (i32, i32) {
    %c0_i32 = arith.constant 0 : i32
    %c0_i32_0 = arith.constant 0 : i32
    %c0_i32_1 = arith.constant 0 : i32
    return %c0_i32, %c0_i32_0 : i32, i32
  }
  func.func @transform_4(%arg0: i32, %arg1: i32) -> (i32, i32) {
    %c0_i32 = arith.constant 0 : i32
    %c0_i32_0 = arith.constant 0 : i32
    %c0_i32_1 = arith.constant 0 : i32
    return %c0_i32, %c0_i32_0 : i32, i32
  }
  func.func @transform_5(%arg0: i32, %arg1: i32) -> (i32, i32) {
    %c0_i32 = arith.constant 0 : i32
    %c0_i32_0 = arith.constant 0 : i32
    %c0_i32_1 = arith.constant 0 : i32
    return %c0_i32, %c0_i32_0 : i32, i32
  }
  func.func @transform_6(%arg0: i32, %arg1: i32) -> (i32, i32) {
    %c0_i32 = arith.constant 0 : i32
    %c0_i32_0 = arith.constant 0 : i32
    %c0_i32_1 = arith.constant 0 : i32
    return %c0_i32, %c0_i32_0 : i32, i32
  }
  func.func @transform_7(%arg0: i32, %arg1: i32) -> (i32, i32) {
    %c0_i32 = arith.constant 0 : i32
    %c0_i32_0 = arith.constant 0 : i32
    %c0_i32_1 = arith.constant 0 : i32
    return %c0_i32, %c0_i32_0 : i32, i32
  }
  func.func @transform_8(%arg0: i32, %arg1: i32) -> (i32, i32) {
    %c0_i32 = arith.constant 0 : i32
    %c0_i32_0 = arith.constant 0 : i32
    %c0_i32_1 = arith.constant 0 : i32
    return %c0_i32, %c0_i32_0 : i32, i32
  }
  func.func @transform_9(%arg0: i32, %arg1: i32) -> (i32, i32) {
    %c0_i32 = arith.constant 0 : i32
    %c0_i32_0 = arith.constant 0 : i32
    %c0_i32_1 = arith.constant 0 : i32
    return %c0_i32, %c0_i32_0 : i32, i32
  }
  func.func @transform_10(%arg0: i32, %arg1: i32) -> (i32, i32) {
    %c0_i32 = arith.constant 0 : i32
    %c0_i32_0 = arith.constant 0 : i32
    %c0_i32_1 = arith.constant 0 : i32
    return %c0_i32, %c0_i32_0 : i32, i32
  }
  func.func @transform_11(%arg0: i32, %arg1: i32) -> (i32, i32) {
    %c0_i32 = arith.constant 0 : i32
    %c0_i32_0 = arith.constant 0 : i32
    %c0_i32_1 = arith.constant 0 : i32
    return %c0_i32, %c0_i32_0 : i32, i32
  }
  func.func @transform_12(%arg0: i32, %arg1: i32) -> (i32, i32) {
    %c0_i32 = arith.constant 0 : i32
    %c0_i32_0 = arith.constant 0 : i32
    %c0_i32_1 = arith.constant 0 : i32
    return %c0_i32, %c0_i32_0 : i32, i32
  }
  func.func @transform_13(%arg0: i32, %arg1: i32) -> (i32, i32) {
    %c0_i32 = arith.constant 0 : i32
    %c0_i32_0 = arith.constant 0 : i32
    %c0_i32_1 = arith.constant 0 : i32
    return %c0_i32, %c0_i32_0 : i32, i32
  }
  func.func @transform_14(%arg0: i32, %arg1: i32) -> (i32, i32) {
    %c0_i32 = arith.constant 0 : i32
    %c0_i32_0 = arith.constant 0 : i32
    %c0_i32_1 = arith.constant 0 : i32
    return %c0_i32, %c0_i32_0 : i32, i32
  }
  func.func @transform_15(%arg0: i32, %arg1: i32) -> (i32, i32) {
    %c0_i32 = arith.constant 0 : i32
    %c0_i32_0 = arith.constant 0 : i32
    %c0_i32_1 = arith.constant 0 : i32
    return %c0_i32, %c0_i32_0 : i32, i32
  }
  func.func @transform_16(%arg0: i32, %arg1: i32) -> (i32, i32, i32) {
    %c0_i32 = arith.constant 0 : i32
    %c0_i32_0 = arith.constant 0 : i32
    return %arg0, %arg1, %c0_i32 : i32, i32, i32
  }
}

</mosaic_0001>

<bundles_post_ra>
// kernel: tpu_custom_call.1
= control target key start
LH: loop header
LB: loop body
LE: loop exit
PB: predicated region body
PF: predicated region fallthrough
CT: control target
= control target key end

     0   :  { %s2059_s0 = inlined_call_operand.vmem [shape: f32[2,8,32], index: 0, kind: input, shape index: {}]   ;;  %s2060_s1 = inlined_call_operand.vmem [shape: f32[2,8,32], index: 1, kind: input, shape index: {}]   ;;  %s2061_s2 = inlined_call_operand.vmem [shape: bf16[32,32], index: 2, kind: input, shape index: {}]   ;;  %s2062_s3 = inlined_call_operand.hbm [shape: bf16[32,64], index: 3, kind: input, shape index: {}]   ;;  %s2063_s4 = inlined_call_operand.vmem [shape: f32[1,32], index: 4, kind: input, shape index: {}]   ;;  %s2064_s5 = inlined_call_operand.vmem [shape: f32[1,64], index: 5, kind: input, shape index: {}]   ;;  %s2065_s6 = inlined_call_operand.hbm [shape: bf16[32,32], index: 6, kind: input, shape index: {}]   ;;  %s2066_s7 = inlined_call_operand.vmem [shape: f32[1,32], index: 7, kind: input, shape index: {}]   ;;  %s2067_s8 = inlined_call_operand.vmem [shape: f32[1,32], index: 8, kind: input, shape index: {}]   ;;  %s2068_s9 = inlined_call_operand.vmem [shape: f32[1,32], index: 9, kind: input, shape index: {}]   ;;  %s2069_s10 = inlined_call_operand.hbm [shape: bf16[32,64], index: 10, kind: input, shape index: {}]   ;;  %s2070_s11 = inlined_call_operand.vmem [shape: f32[1,64], index: 11, kind: input, shape index: {}]   ;;  %s2071_s12 = inlined_call_operand.vmem [shape: bf16[64,32], index: 12, kind: input, shape index: {}]   ;;  %s2072_s13 = inlined_call_operand.vmem [shape: f32[1,32], index: 13, kind: input, shape index: {}]   ;;  %s2073_s14 = inlined_call_operand.vmem [shape: f32[1,32], index: 14, kind: input, shape index: {}]   ;;  %s2074_s15 = inlined_call_operand.vmem [shape: f32[1,32], index: 15, kind: input, shape index: {}]   ;;  %s2075_s16 = inlined_call_operand.hbm [shape: f32[2,8,32], index: 16, kind: output, shape index: {}]  }
   0x1   :  { %2086 = sst [smem:[#allocation21_spill]] %s2059_s0 }
   0x2   :  { %2087 = sst [smem:[#allocation22_spill]] %s2065_s6 }
   0x3   :  { %2088 = sst [smem:[#allocation23_spill]] %s2073_s14 }
   0x4   :  { %2089 = sst [smem:[#allocation24_spill]] %s2074_s15 }
   0x5   :  { %2090 = sst [smem:[#allocation25_spill]] %s2075_s16 }
   0x6   :  { %21 = vsyncpa [#allocation4], 0 }
   0x7   :  { %22 = vsyncpa [#allocation7], 0 }
   0x8   :  { %23 = vsyncpa [#allocation5], 0 }
   0x9   :  { %25 = vsyncpa [#allocation5 + $0x1], 0  ;;  %s1813_s21 = smov 0   ;;  %s1815_s22 = smov 0  }
   0xa   :  { %s1817_s23 = smov 0   ;;  %s1819_s24 = smov 0  }
   0xb   :  { %s1821_s25 = smov 0   ;;  %s1823_s26 = smov 0  }
   0xc LB: > { %2091 = sst [smem:[#allocation13_spill]] %s1690_s21  ;;  %s1310_s27 = sadd.s32 4294967295, %s1710_s26   ;;  %s1710_s26 = sphi %s1823_s26, %s31_s26   ;;  %s1706_s25 = sphi %s1821_s25, %s2116_s25   ;;  %s1702_s24 = sphi %s1819_s24, %s2115_s24   ;;  %s1698_s23 = sphi %s1817_s23, %s2114_s23   ;;  %s1694_s22 = sphi %s1815_s22, %s2118_s22   ;;  %s1690_s21 = sphi %s1813_s21, %s2117_s21  }
   0xd   : > { %2092 = sst [smem:[#allocation14_spill]] %s1698_s23  ;;  %s1311_s28 = sadd.s32 4294967294, %s1710_s26  }
   0xe   : > { %2093 = sst [smem:[#allocation15_spill]] %s1706_s25  ;;  %s43_s29 = sadd.s32 1, %s1706_s25 }
   0xf   : > { %2094 = sst [smem:[#allocation16_spill]] %s1710_s26  ;;  %s400_s30 = sadd.s32 1, %s1698_s23 }
  0x10   : > { %p45_p0 = scmp.ge.s32.totalorder %s43_s29, 2  ;;  %p410_p1 = scmp.ne.s32.totalorder %s1698_s23, %s1694_s22 }
  0x11   : > { %p411_p2 = scmp.eq.s32.totalorder %s1310_s27, 1  ;;  %p416_p3 = scmp.ne.s32.totalorder %s1694_s22, %s1690_s21 }
  0x12   : > { %s2120_s29 = smov (%p45_p0, %s43_s29), 0  ;;  %p417_p5 = scmp.eq.s32.totalorder %s1311_s28, 1 }
  0x13   : > { %2095 = sst [smem:[#allocation17_spill]] %s2120_s29  ;;  %p1853_p4 = por %p411_p2, %p410_p1 }
  0x14   : > { %s395_s17 = ssub.s32 %s1706_s25, %s2120_s29  ;;  %p1312_p6 = scmp.ge.s32.totalorder %s1710_s26, 1 }
  0x15   : > { %s2096_s0 = scalar_select %p1853_p4, 1, 0 }
  0x16   : > { %p398_p7 = scmp.eq.s32.totalorder %s395_s17, 0  ;;  %p1860_p8 = por %p417_p5, %p416_p3 }
  0x17   : > { %2097 = sst [smem:[#allocation18_spill]] %s2096_s0  ;;  %p424_p9 = scmp.lt.s32.totalorder %s1710_s26, 3 }
  0x18   : > { %s2098_s18 = scalar_select %p1860_p8, 1, 0 }
  0x19   : > { %s1866_s19 = scalar_select %p398_p7, %s1698_s23, %s400_s30  }
  0x1a   : > { %2099 = sst [smem:[#allocation19_spill]] %s2098_s18  ;;  %p1868_p10 = pnand %p1312_p6, %p424_p9 }
  0x1b   : > { %2100 = sst [smem:[#allocation20_spill]] %s1866_s19  ;;  %p1872_p11 = scmp.eq.s32.totalorder %s1310_s27, 0 }
  0x1c   : > { %p1416_p12 = pneg %p1868_p10  ;;  %s2103_s6 = sld [smem:[#allocation22_spill]] }
  0x1d   : > { %s1712_s25 = smov [#allocation6]   ;;  %s1713_s19 = smov 64  }
  0x1e   : > { %p1883_p13 = pnand %p1872_p11, %p1416_p12  ;;  %s460_s27 = sshll.u32 %s1712_s25, 4  ;;  %s461_s27 = int_to_ptr.vmem [resolvable:$true] %s460_s27 }
  0x1f   : > { %s1714_s23 = smov 4   ;;  %s438_s28 = sshll.u32 %s2062_s3, 4  ;;  %s439_s28 = int_to_ptr.hbm [resolvable:$true] %s438_s28 }
  0x20   : > { %s1715_s17 = smov [#allocation3]   ;;  %s481_s16 = sshll.u32 %s2069_s10, 4  ;;  %s482_s16 = int_to_ptr.hbm [resolvable:$true] %s481_s16 }
  0x21   : > { %s1716_s25 = smov [#allocation8]  }
  0x22   : > { %s458_s29 = sshll.u32 %s2103_s6, 4  ;;  %s440_s6 = sshll.u32 %s1715_s17, 4  ;;  %s459_s29 = int_to_ptr.hbm [resolvable:$true] %s458_s29  ;;  %s441_s6 = int_to_ptr.vmem [resolvable:$true] %s440_s6 }
  0x23   : > { %1422 = dma.hbm_to_vmem [thread:$0]  (!%p1883_p13), %s459_s29, 256, %s461_s27, [#allocation7], %s1713_s19, %s1713_s19, %s1714_s23  }
  0x24   : > { %1419 = dma.hbm_to_vmem [thread:$0]  (!%p1883_p13), %s439_s28, 256, %s441_s6, [#allocation4], %s1713_s19, %s1713_s19, %s1714_s23  }
  0x25   : > { %s483_s14 = sshll.u32 %s1716_s25, 4  ;;  %531 = sbr.rel (%p1868_p10) target bundleno = 2238 (0x8be), region = 84  ;;  %s484_s14 = int_to_ptr.vmem [resolvable:$true] %s483_s14 }
  0x26   : > { %1425 = dma.hbm_to_vmem [thread:$0]  (!%p1883_p13), %s482_s16, 256, %s484_s14, [#allocation7], %s1713_s19, %s1713_s19, %s1714_s23  }
  0x2a   : > { %1677 = dma.done.wait (%p1872_p11), [#allocation4], 256  }
  0x2b   : > { %1679 = vsyncadd (%p1872_p11), [#allocation4], 4294967040 }
  0x2c   : > { %1681 = dma.done.wait (%p1872_p11), [#allocation7], 512  }
  0x2d   : > { %1683 = vsyncadd (%p1872_p11), [#allocation7], 4294966784  ;;  %p598_p0 = scmp.lt.s32.totalorder %s1702_s24, 1  ;;  %s2105_s23 = sld [smem:[#allocation21_spill]]  ;;  %v1391_v0 = vld [vmem:[%s2061_s2 + $0x8] sm:$0xff]  ;;  %v1393_v1 = vld [vmem:[#allocation3 + $0x8] sm:$0xff] }
  0x2e   : > { %v1390_v2 = vld [vmem:[%s2061_s2] sm:$0xff]  ;;  %v1392_v3 = vld [vmem:[#allocation3] sm:$0xff]  ;;  %644 = vmatpush.bf16.msra.mxu0 %v1391_v0  ;;  %680 = vmatpush.bf16.msra.mxu1 %v1393_v1  ;;  %vm634_vm0 = vcmask 261120   ;;  %vm689_vm1 = vcmask 64512   ;;  %s1719_s15 = smov 112   ;;  %s1720_s16 = smov 104  }
  0x2f   : > { %s599_s6 = scalar_select %p598_p0, %s1702_s24, 1  ;;  %v1501_v8 = vld [vmem:[%s2063_s4] ss:$0 sm:$0xff]  ;;  %vm727_vm2 = vcmask 1043456   ;;  %vm806_vm3 = vcmask 130112   ;;  %vm868_vm4 = vcmask 195712  }
  0x30   : > { %v1502_v9 = vld [vmem:[%s2064_s5] ss:$0 sm:$0xff]  ;;  %s1723_s29 = smov 72   ;;  %s1724_s0 = smov 8   ;;  %vm930_vm5 = vcmask 261312   ;;  %vm1128_vm14 = vcmask 523264  }
  0x31   : > { %s1322_s14 = sshll.u32 %s599_s6, 3  ;;  %s1717_s6 = smov 96  }
  0x32   : > { %s608_s18 = scalar_lea.vmem %s2060_s1, %s1322_s14  ;;  %645 = vmatpush.bf16.msra.mxu0 %v1390_v2  ;;  %681 = vmatpush.bf16.msra.mxu1 %v1392_v3  ;;  %s1726_s19 = smov 24  }
  0x33   : > { %s604_s26 = scalar_lea.vmem %s2105_s23, %s1322_s14  ;;  %v611_v5 = vld [vmem:[%s608_s18] sm:$0xff]  ;;  %s1718_s14 = smov 120  }
  0x34   : > { %v1923_v4 = vld [vmem:[%s604_s26] sm:$0xff]  ;;  %v613_v7 = vpack.c.bf16 %v611_v5, %v611_v5  ;;  %s1721_s23 = smov 88   ;;  %s1722_s26 = smov 80  }
  0x35   : > { %v612_v6 = vpack.c.bf16 %v1923_v4, %v1923_v4  ;;  %s1725_s18 = smov 16   ;;  %s595_s21 = sand.u32 1, %s1694_s22  }
  0x36   : > { %1341 = vmatmul.msk.bf16.vlgmr.msra.gmra.mxu1 %vm634_vm0, %v613_v7  ;;  %s1321_s30 = sshll.u32 %s595_s21, 3  ;;  %s1387_s27 = sshll.u32 %s1702_s24, 3 }
  0x37   : > { %1332 = vmatmul.msk.bf16.vlgmr.msra.gmra.mxu0 %vm634_vm0, %v612_v6  ;;  %s2106_s25 = sld [smem:[#allocation23_spill]]  ;;  %s1180_s20 = scalar_lea.sflag [#allocation5], %s595_s21 }
  0xb3   : > { %v683_v11 = vpop.f32.mrf.mxu1 }
  0xb4   : > { %v647_v10 = vpop.f32.mrf.mxu0  ;;  %v684_v13 = vadd.f32 %v1502_v9, %v683_v11 }
  0xb5   : > { %v648_v12 = vadd.f32 %v1501_v8, %v647_v10 }
  0xb6   : > { %v1935_v15 = vpack.c.bf16 %v684_v13, %v684_v13 }
  0xb7   : > { %v687_v14 = vpack.c.bf16 %v648_v12, %v648_v12 }
  0xb8   : > { %722 = vrot.lane.b32.xlu1 %v1935_v15, %s1717_s6  ;;  %v694_v16 = vsel %vm689_vm1, %v1935_v15, 0 }
  0xb9   : > { %746 = vrot.lane.b32.xlu2 %v687_v14, %s1718_s14  ;;  %703 = vmatpush.bf16.xpose.msra.mxu2 %v694_v16 }
  0xbb   : > { %v685_v18 = vpop.f32.mrf.mxu1 }
  0xbc   : > { %v649_v17 = vpop.f32.mrf.mxu0 }
  0xc0   : > { %748 = vrot.lane.b32.xlu1 %v1935_v15, %s1718_s14  ;;  %1342 = vmatmul.msk.bf16.vlgmr.msra.gmra.mxu2 %vm689_vm1, %v687_v14 }
  0xc1   : > { %810 = vrot.lane.b32.xlu2 %v1935_v15, %s1719_s15 }
  0xc8   : > { %808 = vrot.lane.b32.xlu1 %v687_v14, %s1719_s15  ;;  %s2107_s15 = sld [smem:[#allocation25_spill]] }
  0xc9   : > { %870 = vrot.lane.b32.xlu2 %v687_v14, %s1720_s16 }
 0x113   : > { %v747_v19 = vpop.permute.xlu2 %746 }
 0x11b   : > { %v811_v20 = vpop.permute.xlu2 %810 }
 0x11c   : > { %v816_v21 = vsel %vm689_vm1, %v811_v20, 0 }
 0x11d   : > { %825 = vmatpush.bf16.xpose.msrb.mxu1 %v816_v21 }
 0x123   : > { %v871_v38 = vpop.permute.xlu2 %870 }
 0x12a   : > { %v723_v22 = vpop.permute.xlu1 %722 }
 0x12b   : > { %v729_v23 = vsel %vm727_vm2, %v723_v22, 0 }
 0x12c   : > { %738 = vmatpush.bf16.msra.mxu3 %v729_v23 }
 0x132   : > { %v749_v24 = vpop.permute.xlu1 %748 }
 0x133   : > { %v754_v25 = vsel %vm689_vm1, %v749_v24, 0 }
 0x134   : > { %763 = vmatpush.bf16.xpose.msrb.mxu3 %v754_v25 }
 0x13a   : > { %v809_v26 = vpop.permute.xlu1 %808 }
 0x13b   : > { %1346 = vmatmul.msk.bf16.vlgmr.msrb.gmra.mxu1 %vm689_vm1, %v809_v26 }
 0x143   : > { %v705_v27 = vpop.f32.mrf.mxu2 }
 0x144   : > { %v709_v28 = vsel %vm689_vm1, %v705_v27, -inf }
 0x145   : > { %710 = vmax.xlane.f32.xlu0 %v709_v28 }
 0x14b   : > { %v707_v29 = vpop.f32.mrf.mxu2 }
 0x14c   : > { %v1395_v29 = vld [vmem:[#allocation6 + $0x8] sm:$0xff] }
 0x14d   : > { %963 = vmatpush.bf16.msra.mxu1 %v1395_v29  ;;  %v1398_v29 = vld [vmem:[%s2071_s12] sm:$0xff] }
 0x1b8   : > { %v827_v30 = vpop.f32.mrf.mxu1  ;;  %v711_v31 = vpop.xlane.xlu0 %710 }
 0x1b9   : > { %v831_v32 = vsel %vm689_vm1, %v827_v30, -inf  ;;  %v712_v33 = vsub.f32 %v705_v27, %v711_v31 }
 0x1ba   : > { %832 = vmax.xlane.f32.xlu2 %v831_v32 }
 0x1bb   : > { %v713_v34 = vmul.f32 1.442695, %v712_v33 }
 0x1bd   : > { %1510 = vpow2.f32 %v713_v34 }
 0x1c0   : > { %v829_v35 = vpop.f32.mrf.mxu1 }
 0x1c3   : > { %v1511_v36 = vpop.eup %1510 }
 0x1c4   : > { %v715_v37 = vsel %vm689_vm1, %v1511_v36, 0.0 }
 0x1c5   : > { %716 = vadd.xlane.f32.xlu0 %v715_v37 }
 0x1d9   : > { %872 = vrot.lane.b32.xlu0 %v1935_v15, %s1720_s16  ;;  %s1191_s16 = scalar_lea.hbm %s2107_s15, %s1387_s27 }
 0x22d   : > { %v833_v39 = vpop.xlane.xlu2 %832 }
 0x22e   : > { %v834_v40 = vsub.f32 %v827_v30, %v833_v39  ;;  %v1394_v30 = vld [vmem:[#allocation6] sm:$0xff] }
 0x22f   : > { %964 = vmatpush.bf16.msra.mxu1 %v1394_v30 }
 0x230   : > { %v835_v41 = vmul.f32 1.442695, %v834_v40 }
 0x232   : > { %1512 = vpow2.f32 %v835_v41 }
 0x238   : > { %v1513_v42 = vpop.eup %1512  ;;  %v717_v43 = vpop.xlane.xlu0 %716 }
 0x239   : > { %v837_v44 = vsel %vm689_vm1, %v1513_v42, 0.0  ;;  %1514 = vrcp.f32 %v717_v43 }
 0x23a   : > { %838 = vadd.xlane.f32.xlu2 %v837_v44 }
 0x23f   : > { %v1515_v45 = vpop.eup %1514 }
 0x240   : > { %v719_v46 = vmul.f32 %v1515_v45, %v1511_v36  ;;  %v1503_v36 = vld [vmem:[%s2066_s7] ss:$0 sm:$0xff] }
 0x242   : > { %v720_v47 = vpack.c.bf16 %v719_v46, %v719_v46 }
 0x244   : > { %1343 = vmatmul.msk.bf16.vlgmr.msra.gmra.mxu3 %vm689_vm1, %v720_v47 }
 0x24b   : > { %v873_v48 = vpop.permute.xlu0 %872 }
 0x24c   : > { %v878_v49 = vsel %vm689_vm1, %v873_v48, 0 }
 0x24d   : > { %887 = vmatpush.bf16.xpose.msra.mxu3 %v878_v49 }
 0x254   : > { %1344 = vmatmul.msk.bf16.vlgmr.msrb.gmra.mxu3 %vm689_vm1, %v747_v19 }
 0x264   : > { %1348 = vmatmul.msk.bf16.vlgmr.msra.gmra.mxu3 %vm689_vm1, %v871_v38 }
 0x2ad   : > { %v839_v7 = vpop.xlane.xlu2 %838 }
 0x2c7   : > { %v740_v50 = vpop.f32.mrf.mxu3 }
 0x2c8   : > { %744 = vst.msk [vmem:[#allocation2] sm:$0xff] %vm689_vm1, %v740_v50 }
 0x2cf   : > { %v742_v51 = vpop.f32.mrf.mxu3 }
 0x2d7   : > { %v765_v52 = vpop.f32.mrf.mxu3 }
 0x2d8   : > { %v769_v53 = vsel %vm689_vm1, %v765_v52, -inf }
 0x2d9   : > { %770 = vmax.xlane.f32.xlu1 %v769_v53  ;;  %v1397_v53 = vld [vmem:[#allocation8 + $0x8] sm:$0xff] }
 0x2df   : > { %v767_v54 = vpop.f32.mrf.mxu3 }
 0x2e0   : > { %v1396_v54 = vld [vmem:[#allocation8] sm:$0xff] }
 0x2e7   : > { %v889_v55 = vpop.f32.mrf.mxu3 }
 0x2e8   : > { %v893_v56 = vsel %vm689_vm1, %v889_v55, -inf }
 0x2e9   : > { %894 = vmax.xlane.f32.xlu0 %v893_v56 }
 0x2ef   : > { %v891_v57 = vpop.f32.mrf.mxu3 }
 0x2f2   : > { %781 = vrot.lane.b32.xlu1 %v1935_v15, %s1721_s23 }
 0x34c   : > { %v771_v58 = vpop.xlane.xlu1 %770 }
 0x34d   : > { %v772_v59 = vsub.f32 %v765_v52, %v771_v58 }
 0x34f   : > { %v773_v60 = vmul.f32 1.442695, %v772_v59 }
 0x351   : > { %1516 = vpow2.f32 %v773_v60 }
 0x357   : > { %v1517_v61 = vpop.eup %1516 }
 0x358   : > { %v775_v62 = vsel %vm689_vm1, %v1517_v61, 0.0 }
 0x359   : > { %776 = vadd.xlane.f32.xlu2 %v775_v62 }
 0x35c   : > { %v895_v63 = vpop.xlane.xlu0 %894 }
 0x35d   : > { %v896_v0 = vsub.f32 %v889_v55, %v895_v63 }
 0x35f   : > { %v897_v1 = vmul.f32 1.442695, %v896_v0  ;;  %v1504_v0 = vld [vmem:[%s2067_s8] ss:$0 sm:$0xff] }
 0x361   : > { %1518 = vpow2.f32 %v897_v1 }
 0x362   : > { %1520 = vrcp.f32 %v839_v7 }
 0x364   : > { %v782_v2 = vpop.permute.xlu1 %781 }
 0x365   : > { %v787_v3 = vsel %vm727_vm2, %v782_v2, 0  ;;  %v1505_v2 = vld [vmem:[%s2068_s9] ss:$0 sm:$0xff] }
 0x366   : > { %796 = vmatpush.bf16.msrb.mxu0 %v787_v3 }
 0x367   : > { %v1519_v5 = vpop.eup %1518 }
 0x368   : > { %v899_v6 = vsel %vm689_vm1, %v1519_v5, 0.0  ;;  %v1521_v9 = vpop.eup %1520 }
 0x369   : > { %900 = vadd.xlane.f32.xlu0 %v899_v6  ;;  %v841_v11 = vmul.f32 %v1521_v9, %v1513_v42  ;;  %v1727_v42 = vmov 32.0  }
 0x36b   : > { %v842_v17 = vpack.c.bf16 %v841_v11, %v841_v11 }
 0x371   : > { %843 = vrot.lane.b32.xlu2 %v1935_v15, %s1722_s26 }
 0x37d   : > { %905 = vrot.lane.b32.xlu0 %v1935_v15, %s1723_s29 }
 0x3cc   : > { %v777_v8 = vpop.xlane.xlu2 %776 }
 0x3cd   : > { %1522 = vrcp.f32 %v777_v8  ;;  %v1506_v8 = vld [vmem:[%s2070_s11] ss:$0 sm:$0xff] }
 0x3d3   : > { %v1523_v10 = vpop.eup %1522 }
 0x3d4   : > { %v779_v12 = vmul.f32 %v1523_v10, %v1517_v61  ;;  %v844_v13 = vpop.permute.xlu2 %843 }
 0x3d5   : > { %v849_v14 = vsel %vm727_vm2, %v844_v13, 0 }
 0x3d6   : > { %858 = vmatpush.bf16.msrb.mxu2 %v849_v14  ;;  %v780_v16 = vpack.c.bf16 %v779_v12, %v779_v12 }
 0x3d8   : > { %1345 = vmatmul.msk.bf16.vlgmr.msrb.gmra.mxu0 %vm689_vm1, %v780_v16  ;;  %v1401_v16 = vld [vmem:[%s2071_s12 + $0x18] sm:$0xff] }
 0x3d9   : > { %1347 = vmatmul.msk.bf16.vlgmr.msrb.gmra.mxu2 %vm689_vm1, %v842_v17  ;;  %1136 = vmatpush.bf16.msrb.mxu3 %v1401_v16 }
 0x3da   : > { %1040 = vmatpush.bf16.msra.mxu2 %v1397_v53 }
 0x3dc   : > { %v901_v18 = vpop.xlane.xlu0 %900 }
 0x3dd   : > { %1524 = vrcp.f32 %v901_v18 }
 0x3de   : > { %1526 = vrcp.f32 %v1727_v42  ;;  %1041 = vmatpush.bf16.msra.mxu2 %v1396_v54 }
 0x3e3   : > { %v1525_v15 = vpop.eup %1524 }
 0x3e4   : > { %v903_v19 = vmul.f32 %v1525_v15, %v1519_v5  ;;  %v1527_v43 = vpop.eup %1526 }
 0x3e5   : > { %v977_v44 = vmul.f32 32.0, %v1527_v43  ;;  %vm981_vm6 = vweird.f32 %v1527_v43 }
 0x3e6   : > { %v904_v22 = vpack.c.bf16 %v903_v19, %v903_v19 }
 0x3e7   : > { %v978_v45 = vsub.f32 1.0, %v977_v44 }
 0x3e9   : > { %v979_v46 = vmul.f32 %v1527_v43, %v978_v45 }
 0x3eb   : > { %v980_v47 = vadd.f32 %v1527_v43, %v979_v46 }
 0x3ed   : > { %v1976_v48 = vsel %vm981_vm6, %v1527_v43, %v980_v47 }
 0x3ef   : > { %v906_v20 = vpop.permute.xlu0 %905 }
 0x3f0   : > { %v911_v21 = vsel %vm727_vm2, %v906_v20, 0  ;;  %v1400_v20 = vld [vmem:[%s2071_s12 + $0x10] sm:$0xff] }
 0x3f1   : > { %920 = vmatpush.bf16.msra.mxu0 %v911_v21  ;;  %1137 = vmatpush.bf16.msrb.mxu3 %v1400_v20 }
 0x3f4   : > { %1349 = vmatmul.msk.bf16.vlgmr.msra.gmra.mxu0 %vm689_vm1, %v904_v22 }
 0x455   : > { %v798_v23 = vpop.f32.mrf.mxu0 }
 0x456   : > { %803 = vrot.lane.b32.xlu1 %v798_v23, %s1724_s0  ;;  %s2109_s0 = sld [smem:[#allocation24_spill]] }
 0x45c   : > { %v860_v24 = vpop.f32.mrf.mxu2  ;;  %v1509_v16 = vld [vmem:[%s2109_s0] ss:$0 sm:$0xff] }
 0x45d   : > { %v800_v25 = vpop.f32.mrf.mxu0 }
 0x45e   : > { %865 = vrot.lane.b32.xlu1 %v860_v24, %s1725_s18  ;;  %v1399_v25 = vld [vmem:[%s2071_s12 + $0x8] sm:$0xff]  ;;  %s597_s18 = scalar_lea.vmem [#allocation9], %s1321_s30  ;;  %s1644_s30 = scalar_lea.hbm %s2107_s15, 16 }
 0x45f   : > { %1138 = vmatpush.bf16.msrb.mxu3 %v1399_v25  ;;  %s1193_s24 = sshll.u32 %s597_s18, 4  ;;  %s1194_s24 = int_to_ptr.vmem [resolvable:$true] %s1193_s24 }
 0x463   : > { %1139 = vmatpush.bf16.msrb.mxu3 %v1398_v29 }
 0x464   : > { %v862_v26 = vpop.f32.mrf.mxu2 }
 0x471   : > { %v922_v27 = vpop.f32.mrf.mxu0 }
 0x472   : > { %927 = vrot.lane.b32.xlu2 %v922_v27, %s1726_s19  ;;  %s1195_s19 = sshll.u32 %s1191_s16, 4  ;;  %s1196_s19 = int_to_ptr.hbm [resolvable:$true] %s1195_s19 }
 0x473   : > { %s1638_s28 = sshra.s32 %s1196_s19, 4  ;;  %s1639_s28 = int_to_ptr.hbm [resolvable:$true] %s1638_s28 }
 0x474   : > { %s1640_s27 = scalar_lea.hbm %s1639_s28, 8  ;;  %p1645_p5 = scmp.lt.s32.totalorder %s1639_s28, %s2107_s15 }
 0x475   : > { %p1641_p1 = scmp.ne.s32.totalorder %s1639_s28, %s1640_s27  ;;  %p1646_p6 = scmp.lt.s32.totalorder %s1644_s30, %s1640_s27 }
 0x477   : > { %p1642_p2 = pnand %p1641_p1, %p1853_p4  ;;  %p1647_p7 = por %p1646_p6, %p1645_p5 }
 0x479   : > { %v924_v28 = vpop.f32.mrf.mxu0  ;;  %p1643_p3 = pneg %p1642_p2 }
 0x47b   : > { %p1648_p9 = pnand %p1647_p7, %p1643_p3 }
 0x4c8   : > { %v804_v31 = vpop.permute.xlu1 %803 }
 0x4c9   : > { %807 = vst.msk [vmem:[#allocation2] sm:$0xff] %vm806_vm3, %v804_v31 }
 0x4cc   : > { %v928_v33 = vpop.permute.xlu2 %927 }
 0x4d0   : > { %v866_v32 = vpop.permute.xlu1 %865 }
 0x4d1   : > { %869 = vst.msk [vmem:[#allocation2] sm:$0xff] %vm868_vm4, %v866_v32 }
 0x4d2   : > { %931 = vst.msk [vmem:[#allocation2] sm:$0xff] %vm930_vm5, %v928_v33 }
 0x4d9   : > { %v932_v34 = vld [vmem:[#allocation2] sm:$0xff] }
 0x4da   : > { %v933_v35 = vpack.c.bf16 %v932_v34, %v932_v34 }
 0x4dc   : > { %1358 = vmatmul.msk.bf16.vlgmr.msra.gmra.mxu1 %vm634_vm0, %v933_v35 }
 0x559   : > { %v966_v37 = vpop.f32.mrf.mxu1 }
 0x55a   : > { %v967_v38 = vadd.f32 %v1503_v36, %v966_v37 }
 0x55c   : > { %v970_v39 = vadd.f32 %v967_v38, %v1923_v4 }
 0x55e   : > { %v973_v40 = vsel %vm634_vm0, %v970_v39, 0.0 }
 0x55f   : > { %974 = vadd.xlane.f32.xlu0 %v973_v40 }
 0x561   : > { %v968_v41 = vpop.f32.mrf.mxu1 }
 0x5d2   : > { %v975_v49 = vpop.xlane.xlu0 %974 }
 0x5d3   : > { %v983_v50 = vmul.f32 %v1976_v48, %v975_v49 }
 0x5d5   : > { %v984_v51 = vsub.f32 %v970_v39, %v983_v50 }
 0x5d7   : > { %v985_v52 = vmul.f32 %v984_v51, %v984_v51 }
 0x5d9   : > { %v986_v4 = vsel %vm634_vm0, %v985_v52, 0.0 }
 0x5da   : > { %987 = vadd.xlane.f32.xlu1 %v986_v4 }
 0x64d   : > { %v988_v55 = vpop.xlane.xlu1 %987 }
 0x64e   : > { %v989_v56 = vmul.f32 %v988_v55, %v1976_v48 }
 0x650   : > { %v990_v57 = vadd.f32 1e-05, %v989_v56  ;;  %v1507_v56 = vld [vmem:[%s2072_s13] ss:$0 sm:$0xff] }
 0x652   : > { %1528 = vrsqrt.f32 %v990_v57  ;;  %vm997_vm8 = vweird.f32 %v990_v57 }
 0x658   : > { %v1529_v58 = vpop.eup %1528 }
 0x659   : > { %v992_v59 = vmul.f32 %v1529_v58, %v990_v57  ;;  %vm998_vm7 = vweird.f32 %v1529_v58 }
 0x65a   : > { %vm999_vm9 = vmor %vm997_vm8, %vm998_vm7 }
 0x65b   : > { %v993_v60 = vmul.f32 %v1529_v58, %v992_v59 }
 0x65d   : > { %v994_v61 = vmul.f32 0.5, %v993_v60 }
 0x65f   : > { %v995_v62 = vsub.f32 1.5, %v994_v61 }
 0x661   : > { %v996_v63 = vmul.f32 %v1529_v58, %v995_v62 }
 0x663   : > { %v1000_v1 = vsel %vm999_vm9, %v1529_v58, %v996_v63 }
 0x664   : > { %v1001_v3 = vmul.f32 %v1000_v1, %v984_v51 }
 0x666   : > { %v1005_v5 = vmul.f32 %v1504_v0, %v1001_v3 }
 0x668   : > { %v1987_v6 = vadd.f32 %v1505_v2, %v1005_v5 }
 0x66a   : > { %v1010_v7 = vpack.c.bf16 %v1987_v6, %v1987_v6 }
 0x66c   : > { %1367 = vmatmul.msk.bf16.vlgmr.msra.gmra.mxu2 %vm634_vm0, %v1010_v7 }
 0x6ef   : > { %v1043_v9 = vpop.f32.mrf.mxu2 }
 0x6f0   : > { %v1044_v10 = vadd.f32 %v1506_v8, %v1043_v9 }
 0x6f2   : > { %v1048_v11 = vmul.f32 0.70710677, %v1044_v10  ;;  %v1047_v4 = vmul.f32 0.5, %v1044_v10 }
 0x6f4   : > { %v1049_v12 = vmul.f32 %v1048_v11, %v1048_v11 }
 0x6f6   : > { %v1050_v13 = vmin.f32 %v1049_v12, 16.0 }
 0x6f7   : > { %v1045_v14 = vpop.f32.mrf.mxu2 }
 0x6f8   : > { %v1051_v17 = vmul.f32 2.1237322e-06, %v1050_v13  ;;  %v1062_v18 = vmul.f32 3.8918573e-05, %v1050_v13 }
 0x6fa   : > { %v1052_v15 = vadd.f32 0.00028619796, %v1051_v17  ;;  %v1063_v19 = vadd.f32 0.001143296, %v1062_v18 }
 0x6fc   : > { %v1053_v21 = vmul.f32 %v1052_v15, %v1050_v13  ;;  %v1064_v22 = vmul.f32 %v1063_v19, %v1050_v13 }
 0x6fe   : > { %v1065_v23 = vadd.f32 0.014752088, %v1064_v22  ;;  %v1054_v24 = vadd.f32 0.0036580483, %v1053_v21 }
 0x700   : > { %v1066_v26 = vmul.f32 %v1065_v23, %v1050_v13  ;;  %v1055_v28 = vmul.f32 %v1054_v24, %v1050_v13 }
 0x702   : > { %v1067_v27 = vadd.f32 0.112945676, %v1066_v26  ;;  %v1056_v32 = vadd.f32 0.05243302, %v1055_v28 }
 0x704   : > { %v1068_v30 = vmul.f32 %v1067_v27, %v1050_v13  ;;  %v1057_v35 = vmul.f32 %v1056_v32, %v1050_v13 }
 0x706   : > { %v1069_v31 = vadd.f32 0.4994258, %v1068_v30  ;;  %v1058_v36 = vadd.f32 0.18741608, %v1057_v35 }
 0x708   : > { %v1070_v33 = vmul.f32 %v1069_v31, %v1050_v13  ;;  %v1059_v38 = vmul.f32 %v1058_v36, %v1050_v13  ;;  %v1508_v13 = vld [vmem:[%s2106_s25] ss:$0 sm:$0xff] }
 0x70a   : > { %v1071_v34 = vadd.f32 1.0, %v1070_v33  ;;  %v1060_v42 = vadd.f32 1.1283791, %v1059_v38 }
 0x70c   : > { %1530 = vrcp.f32 %v1071_v34  ;;  %v1083_v41 = vand.u32 2147483648, %v1071_v34  ;;  %v1081_v44 = vand.u32 2147483647, %v1071_v34  ;;  %vm1077_vm11 = vweird.f32 %v1071_v34 }
 0x70d   : > { %v1061_v47 = vmul.f32 %v1060_v42, %v1048_v11 }
 0x70e   : > { %v1084_v46 = vor.u32 1.1754944e-38, %v1083_v41  ;;  %vm1082_vm13 = vcmp.eq.f32.partialorder %v1081_v44, 8.507059e+37 }
 0x712   : > { %v1531_v37 = vpop.eup %1530 }
 0x713   : > { %v1073_v39 = vmul.f32 %v1531_v37, %v1071_v34  ;;  %vm1078_vm10 = vweird.f32 %v1531_v37 }
 0x714   : > { %vm1079_vm12 = vmor %vm1077_vm11, %vm1078_vm10 }
 0x715   : > { %v1074_v40 = vsub.f32 1.0, %v1073_v39 }
 0x717   : > { %v1075_v43 = vmul.f32 %v1531_v37, %v1074_v40 }
 0x719   : > { %v1076_v45 = vadd.f32 %v1531_v37, %v1075_v43 }
 0x71b   : > { %v1080_v49 = vsel %vm1079_vm12, %v1531_v37, %v1076_v45 }
 0x71c   : > { %v1085_v50 = vsel %vm1082_vm13, %v1084_v46, %v1080_v49 }
 0x71d   : > { %v1086_v51 = vmul.f32 %v1085_v50, %v1061_v47 }
 0x71f   : > { %v1368_v52 = vclamps-f32 %v1086_v51, 1.0 }
 0x721   : > { %v1089_v53 = vadd.f32 1.0, %v1368_v52 }
 0x723   : > { %v1090_v54 = vmul.f32 %v1089_v53, %v1047_v4 }
 0x725   : > { %v1091_v55 = vpack.c.bf16 %v1090_v54, %v1090_v54 }
 0x727   : > { %1385 = vmatmul.msk.bf16.vlgmr.msrb.gmra.mxu3 %vm1128_vm14, %v1091_v55 }
 0x7aa   : > { %v1141_v57 = vpop.f32.mrf.mxu3 }
 0x7ab   : > { %v1142_v58 = vadd.f32 %v1507_v56, %v1141_v57 }
 0x7ad   : > { %v1145_v59 = vadd.f32 %v1142_v58, %v1987_v6 }
 0x7af   : > { %v1148_v60 = vsel %vm634_vm0, %v1145_v59, 0.0 }
 0x7b0   : > { %1149 = vadd.xlane.f32.xlu2 %v1148_v60 }
 0x7b2   : > { %v1143_v61 = vpop.f32.mrf.mxu3 }
 0x823   : > { %v1150_v62 = vpop.xlane.xlu2 %1149 }
 0x824   : > { %v1151_v63 = vmul.f32 %v1150_v62, %v1976_v48 }
 0x826   : > { %v1152_v0 = vsub.f32 %v1145_v59, %v1151_v63 }
 0x828   : > { %v1153_v1 = vmul.f32 %v1152_v0, %v1152_v0 }
 0x82a   : > { %v1154_v2 = vsel %vm634_vm0, %v1153_v1, 0.0 }
 0x82b   : > { %1155 = vadd.xlane.f32.xlu0 %v1154_v2 }
 0x89e   : > { %v1156_v3 = vpop.xlane.xlu0 %1155 }
 0x89f   : > { %v1157_v5 = vmul.f32 %v1156_v3, %v1976_v48 }
 0x8a1   : > { %v1158_v7 = vadd.f32 1e-05, %v1157_v5 }
 0x8a3   : > { %1532 = vrsqrt.f32 %v1158_v7  ;;  %vm1165_vm1 = vweird.f32 %v1158_v7 }
 0x8a9   : > { %v1533_v6 = vpop.eup %1532 }
 0x8aa   : > { %v1160_v8 = vmul.f32 %v1533_v6, %v1158_v7  ;;  %vm1166_vm15 = vweird.f32 %v1533_v6 }
 0x8ab   : > { %vm1167_vm2 = vmor %vm1165_vm1, %vm1166_vm15 }
 0x8ac   : > { %v1161_v9 = vmul.f32 %v1533_v6, %v1160_v8 }
 0x8ae   : > { %v1162_v10 = vmul.f32 0.5, %v1161_v9 }
 0x8b0   : > { %v1163_v11 = vsub.f32 1.5, %v1162_v10 }
 0x8b2   : > { %v1164_v12 = vmul.f32 %v1533_v6, %v1163_v11 }
 0x8b4   : > { %v1168_v48 = vsel %vm1167_vm2, %v1533_v6, %v1164_v12 }
 0x8b5   : > { %v1169_v14 = vmul.f32 %v1168_v48, %v1152_v0 }
 0x8b7   : > { %v1173_v17 = vmul.f32 %v1508_v13, %v1169_v14 }
 0x8b9   : > { %v1177_v18 = vadd.f32 %v1509_v16, %v1173_v17 }
 0x8bb   : > { %1178 = vst.msk [vmem:[%s597_s18] sm:$0xff] %vm634_vm0, %v1177_v18 }
 0x8bc   : > { %1651 = shalt.err (!%p1648_p9)
}
 0x8bd   : > { %1414 = dma.vmem_to_hbm [thread:$0]  (%p1853_p4), %s1194_s24, 128, %s1196_s19, %s1180_s20  }
 0x8be PF: > { %s2110_s21 = sld [smem:[#allocation16_spill]] }
 0x8bf   : > { %s2111_s16 = sld [smem:[#allocation13_spill]] }
 0x8c4   : > { %p1436_p10 = scmp.ge.s32.totalorder %s2110_s21, 2 }
 0x8c5   : > { %s1207_s29 = sand.u32 1, %s2111_s16  }
 0x8c6   : > { %p1427_p11 = pnand %p1436_p10, %p1860_p8  ;;  %s1208_s0 = scalar_lea.sflag [#allocation5], %s1207_s29 }
 0x8c8   : > { %p1428_p12 = pneg %p1427_p11 }
 0x8ca   : > { %1685 = dma.done.wait (%p1428_p12), %s1208_s0, 128  }
 0x8cb   : > { %1687 = vsyncadd (%p1428_p12), %s1208_s0, 4294967168  ;;  %s31_s26 = sadd.s32 1, %s2110_s21   ;;  %s2113_s18 = sld [smem:[#allocation14_spill]] }
 0x8cc   : > { %p28_p13 = scmp.ge.s32.totalorder %s31_s26, 4   ;;  %s2114_s23 = sld [smem:[#allocation20_spill]] }
 0x8cd   : > { %s2115_s24 = sld [smem:[#allocation15_spill]]  ;;  %s2117_s21 = smov %s1694_s22 }
 0x8ce   : > { %s2116_s25 = sld [smem:[#allocation17_spill]]  ;;  %30 = sbr.rel (!%p28_p13) target bundleno = 12 (0xc), region = 135 }
 0x8d1   : > { %s2118_s22 = smov %s2113_s18 }
 0x8d3   :  { %1214 = vsyncpa [#allocation4], 1 }
 0x8d4   :  { %1216 = vsyncpa [#allocation4 + $0x1], 1 }
 0x8d5   :  { %1217 = vsyncpa [#allocation7], 1 }
 0x8d6   :  { %1218 = vsyncpa [#allocation5], 1 }
 0x8d7   :  { %1220 = vsyncpa [#allocation5 + $0x1], 1 }

// kernel: tpu_custom_call.1
= control target key start
LH: loop header
LB: loop body
LE: loop exit
PB: predicated region body
PF: predicated region fallthrough
CT: control target
= control target key end

     0   :  { %s2059_s0 = inlined_call_operand.vmem [shape: f32[2,8,32], index: 0, kind: input, shape index: {}]   ;;  %s2060_s1 = inlined_call_operand.vmem [shape: f32[2,8,32], index: 1, kind: input, shape index: {}]   ;;  %s2061_s2 = inlined_call_operand.vmem [shape: bf16[32,32], index: 2, kind: input, shape index: {}]   ;;  %s2062_s3 = inlined_call_operand.hbm [shape: bf16[32,64], index: 3, kind: input, shape index: {}]   ;;  %s2063_s4 = inlined_call_operand.vmem [shape: f32[1,32], index: 4, kind: input, shape index: {}]   ;;  %s2064_s5 = inlined_call_operand.vmem [shape: f32[1,64], index: 5, kind: input, shape index: {}]   ;;  %s2065_s6 = inlined_call_operand.hbm [shape: bf16[32,32], index: 6, kind: input, shape index: {}]   ;;  %s2066_s7 = inlined_call_operand.vmem [shape: f32[1,32], index: 7, kind: input, shape index: {}]   ;;  %s2067_s8 = inlined_call_operand.vmem [shape: f32[1,32], index: 8, kind: input, shape index: {}]   ;;  %s2068_s9 = inlined_call_operand.vmem [shape: f32[1,32], index: 9, kind: input, shape index: {}]   ;;  %s2069_s10 = inlined_call_operand.hbm [shape: bf16[32,64], index: 10, kind: input, shape index: {}]   ;;  %s2070_s11 = inlined_call_operand.vmem [shape: f32[1,64], index: 11, kind: input, shape index: {}]   ;;  %s2071_s12 = inlined_call_operand.vmem [shape: bf16[64,32], index: 12, kind: input, shape index: {}]   ;;  %s2072_s13 = inlined_call_operand.vmem [shape: f32[1,32], index: 13, kind: input, shape index: {}]   ;;  %s2073_s14 = inlined_call_operand.vmem [shape: f32[1,32], index: 14, kind: input, shape index: {}]   ;;  %s2074_s15 = inlined_call_operand.vmem [shape: f32[1,32], index: 15, kind: input, shape index: {}]   ;;  %s2075_s16 = inlined_call_operand.hbm [shape: f32[2,8,32], index: 16, kind: output, shape index: {}]  }
   0x1   :  { %2086 = sst [smem:[#allocation21_spill]] %s2059_s0 }
   0x2   :  { %2087 = sst [smem:[#allocation22_spill]] %s2065_s6 }
   0x3   :  { %2088 = sst [smem:[#allocation23_spill]] %s2073_s14 }
   0x4   :  { %2089 = sst [smem:[#allocation24_spill]] %s2074_s15 }
   0x5   :  { %2090 = sst [smem:[#allocation25_spill]] %s2075_s16 }
   0x6   :  { %21 = vsyncpa [#allocation4], 0 }
   0x7   :  { %22 = vsyncpa [#allocation7], 0 }
   0x8   :  { %23 = vsyncpa [#allocation5], 0 }
   0x9   :  { %25 = vsyncpa [#allocation5 + $0x1], 0  ;;  %s1813_s21 = smov 0   ;;  %s1815_s22 = smov 0  }
   0xa   :  { %s1817_s23 = smov 0   ;;  %s1819_s24 = smov 0  }
   0xb   :  { %s1821_s25 = smov 0   ;;  %s1823_s26 = smov 0  }
   0xc LB: > { %2091 = sst [smem:[#allocation13_spill]] %s1690_s21  ;;  %s1310_s27 = sadd.s32 4294967295, %s1710_s26   ;;  %s1710_s26 = sphi %s1823_s26, %s31_s26   ;;  %s1706_s25 = sphi %s1821_s25, %s2116_s25   ;;  %s1702_s24 = sphi %s1819_s24, %s2115_s24   ;;  %s1698_s23 = sphi %s1817_s23, %s2114_s23   ;;  %s1694_s22 = sphi %s1815_s22, %s2118_s22   ;;  %s1690_s21 = sphi %s1813_s21, %s2117_s21  }
   0xd   : > { %2092 = sst [smem:[#allocation14_spill]] %s1698_s23  ;;  %s1311_s28 = sadd.s32 4294967294, %s1710_s26  }
   0xe   : > { %2093 = sst [smem:[#allocation15_spill]] %s1706_s25  ;;  %s43_s29 = sadd.s32 1, %s1706_s25 }
   0xf   : > { %2094 = sst [smem:[#allocation16_spill]] %s1710_s26  ;;  %s400_s30 = sadd.s32 1, %s1698_s23 }
  0x10   : > { %p45_p0 = scmp.ge.s32.totalorder %s43_s29, 2  ;;  %p410_p1 = scmp.ne.s32.totalorder %s1698_s23, %s1694_s22 }
  0x11   : > { %p411_p2 = scmp.eq.s32.totalorder %s1310_s27, 1  ;;  %p416_p3 = scmp.ne.s32.totalorder %s1694_s22, %s1690_s21 }
  0x12   : > { %s2120_s29 = smov (%p45_p0, %s43_s29), 0  ;;  %p417_p5 = scmp.eq.s32.totalorder %s1311_s28, 1 }
  0x13   : > { %2095 = sst [smem:[#allocation17_spill]] %s2120_s29  ;;  %p1853_p4 = por %p411_p2, %p410_p1 }
  0x14   : > { %s395_s17 = ssub.s32 %s1706_s25, %s2120_s29  ;;  %p1312_p6 = scmp.ge.s32.totalorder %s1710_s26, 1 }
  0x15   : > { %s2096_s0 = scalar_select %p1853_p4, 1, 0 }
  0x16   : > { %p398_p7 = scmp.eq.s32.totalorder %s395_s17, 0  ;;  %p1860_p8 = por %p417_p5, %p416_p3 }
  0x17   : > { %2097 = sst [smem:[#allocation18_spill]] %s2096_s0  ;;  %p424_p9 = scmp.lt.s32.totalorder %s1710_s26, 3 }
  0x18   : > { %s2098_s18 = scalar_select %p1860_p8, 1, 0 }
  0x19   : > { %s1866_s19 = scalar_select %p398_p7, %s1698_s23, %s400_s30  }
  0x1a   : > { %2099 = sst [smem:[#allocation19_spill]] %s2098_s18  ;;  %p1868_p10 = pnand %p1312_p6, %p424_p9 }
  0x1b   : > { %2100 = sst [smem:[#allocation20_spill]] %s1866_s19  ;;  %p1872_p11 = scmp.eq.s32.totalorder %s1310_s27, 0 }
  0x1c   : > { %p1416_p12 = pneg %p1868_p10  ;;  %s2103_s6 = sld [smem:[#allocation22_spill]] }
  0x1d   : > { %s1712_s25 = smov [#allocation6]   ;;  %s1713_s19 = smov 64  }
  0x1e   : > { %p1883_p13 = pnand %p1872_p11, %p1416_p12  ;;  %s460_s27 = sshll.u32 %s1712_s25, 4  ;;  %s461_s27 = int_to_ptr.vmem [resolvable:$true] %s460_s27 }
  0x1f   : > { %s1714_s23 = smov 4   ;;  %s438_s28 = sshll.u32 %s2062_s3, 4  ;;  %s439_s28 = int_to_ptr.hbm [resolvable:$true] %s438_s28 }
  0x20   : > { %s1715_s17 = smov [#allocation3]   ;;  %s481_s16 = sshll.u32 %s2069_s10, 4  ;;  %s482_s16 = int_to_ptr.hbm [resolvable:$true] %s481_s16 }
  0x21   : > { %s1716_s25 = smov [#allocation8]  }
  0x22   : > { %s458_s29 = sshll.u32 %s2103_s6, 4  ;;  %s440_s6 = sshll.u32 %s1715_s17, 4  ;;  %s459_s29 = int_to_ptr.hbm [resolvable:$true] %s458_s29  ;;  %s441_s6 = int_to_ptr.vmem [resolvable:$true] %s440_s6 }
  0x23   : > { %1422 = dma.hbm_to_vmem [thread:$0]  (!%p1883_p13), %s459_s29, 256, %s461_s27, [#allocation7], %s1713_s19, %s1713_s19, %s1714_s23  }
  0x24   : > { %1419 = dma.hbm_to_vmem [thread:$0]  (!%p1883_p13), %s439_s28, 256, %s441_s6, [#allocation4], %s1713_s19, %s1713_s19, %s1714_s23  }
  0x25   : > { %s483_s14 = sshll.u32 %s1716_s25, 4  ;;  %531 = sbr.rel (%p1868_p10) target bundleno = 2238 (0x8be), region = 84  ;;  %s484_s14 = int_to_ptr.vmem [resolvable:$true] %s483_s14 }
  0x26   : > { %1425 = dma.hbm_to_vmem [thread:$0]  (!%p1883_p13), %s482_s16, 256, %s484_s14, [#allocation7], %s1713_s19, %s1713_s19, %s1714_s23  }
  0x2a   : > { %1677 = dma.done.wait (%p1872_p11), [#allocation4], 256  }
  0x2b   : > { %1679 = vsyncadd (%p1872_p11), [#allocation4], 4294967040 }
  0x2c   : > { %1681 = dma.done.wait (%p1872_p11), [#allocation7], 512  }
  0x2d   : > { %1683 = vsyncadd (%p1872_p11), [#allocation7], 4294966784  ;;  %p598_p0 = scmp.lt.s32.totalorder %s1702_s24, 1  ;;  %s2105_s23 = sld [smem:[#allocation21_spill]]  ;;  %v1391_v0 = vld [vmem:[%s2061_s2 + $0x8] sm:$0xff]  ;;  %v1393_v1 = vld [vmem:[#allocation3 + $0x8] sm:$0xff] }
  0x2e   : > { %v1390_v2 = vld [vmem:[%s2061_s2] sm:$0xff]  ;;  %v1392_v3 = vld [vmem:[#allocation3] sm:$0xff]  ;;  %644 = vmatpush.bf16.msra.mxu0 %v1391_v0  ;;  %680 = vmatpush.bf16.msra.mxu1 %v1393_v1  ;;  %vm634_vm0 = vcmask 261120   ;;  %vm689_vm1 = vcmask 64512   ;;  %s1719_s15 = smov 112   ;;  %s1720_s16 = smov 104  }
  0x2f   : > { %s599_s6 = scalar_select %p598_p0, %s1702_s24, 1  ;;  %v1501_v8 = vld [vmem:[%s2063_s4] ss:$0 sm:$0xff]  ;;  %vm727_vm2 = vcmask 1043456   ;;  %vm806_vm3 = vcmask 130112   ;;  %vm868_vm4 = vcmask 195712  }
  0x30   : > { %v1502_v9 = vld [vmem:[%s2064_s5] ss:$0 sm:$0xff]  ;;  %s1723_s29 = smov 72   ;;  %s1724_s0 = smov 8   ;;  %vm930_vm5 = vcmask 261312   ;;  %vm1128_vm14 = vcmask 523264  }
  0x31   : > { %s1322_s14 = sshll.u32 %s599_s6, 3  ;;  %s1717_s6 = smov 96  }
  0x32   : > { %s608_s18 = scalar_lea.vmem %s2060_s1, %s1322_s14  ;;  %645 = vmatpush.bf16.msra.mxu0 %v1390_v2  ;;  %681 = vmatpush.bf16.msra.mxu1 %v1392_v3  ;;  %s1726_s19 = smov 24  }
  0x33   : > { %s604_s26 = scalar_lea.vmem %s2105_s23, %s1322_s14  ;;  %v611_v5 = vld [vmem:[%s608_s18] sm:$0xff]  ;;  %s1718_s14 = smov 120  }
  0x34   : > { %v1923_v4 = vld [vmem:[%s604_s26] sm:$0xff]  ;;  %v613_v7 = vpack.c.bf16 %v611_v5, %v611_v5  ;;  %s1721_s23 = smov 88   ;;  %s1722_s26 = smov 80  }
  0x35   : > { %v612_v6 = vpack.c.bf16 %v1923_v4, %v1923_v4  ;;  %s1725_s18 = smov 16   ;;  %s595_s21 = sand.u32 1, %s1694_s22  }
  0x36   : > { %1341 = vmatmul.msk.bf16.vlgmr.msra.gmra.mxu1 %vm634_vm0, %v613_v7  ;;  %s1321_s30 = sshll.u32 %s595_s21, 3  ;;  %s1387_s27 = sshll.u32 %s1702_s24, 3 }
  0x37   : > { %1332 = vmatmul.msk.bf16.vlgmr.msra.gmra.mxu0 %vm634_vm0, %v612_v6  ;;  %s2106_s25 = sld [smem:[#allocation23_spill]]  ;;  %s1180_s20 = scalar_lea.sflag [#allocation5], %s595_s21 }
  0xb3   : > { %v683_v11 = vpop.f32.mrf.mxu1 }
  0xb4   : > { %v647_v10 = vpop.f32.mrf.mxu0  ;;  %v684_v13 = vadd.f32 %v1502_v9, %v683_v11 }
  0xb5   : > { %v648_v12 = vadd.f32 %v1501_v8, %v647_v10 }
  0xb6   : > { %v1935_v15 = vpack.c.bf16 %v684_v13, %v684_v13 }
  0xb7   : > { %v687_v14 = vpack.c.bf16 %v648_v12, %v648_v12 }
  0xb8   : > { %722 = vrot.lane.b32.xlu1 %v1935_v15, %s1717_s6  ;;  %v694_v16 = vsel %vm689_vm1, %v1935_v15, 0 }
  0xb9   : > { %746 = vrot.lane.b32.xlu2 %v687_v14, %s1718_s14  ;;  %703 = vmatpush.bf16.xpose.msra.mxu2 %v694_v16 }
  0xbb   : > { %v685_v18 = vpop.f32.mrf.mxu1 }
  0xbc   : > { %v649_v17 = vpop.f32.mrf.mxu0 }
  0xc0   : > { %748 = vrot.lane.b32.xlu1 %v1935_v15, %s1718_s14  ;;  %1342 = vmatmul.msk.bf16.vlgmr.msra.gmra.mxu2 %vm689_vm1, %v687_v14 }
  0xc1   : > { %810 = vrot.lane.b32.xlu2 %v1935_v15, %s1719_s15 }
  0xc8   : > { %808 = vrot.lane.b32.xlu1 %v687_v14, %s1719_s15  ;;  %s2107_s15 = sld [smem:[#allocation25_spill]] }
  0xc9   : > { %870 = vrot.lane.b32.xlu2 %v687_v14, %s1720_s16 }
 0x113   : > { %v747_v19 = vpop.permute.xlu2 %746 }
 0x11b   : > { %v811_v20 = vpop.permute.xlu2 %810 }
 0x11c   : > { %v816_v21 = vsel %vm689_vm1, %v811_v20, 0 }
 0x11d   : > { %825 = vmatpush.bf16.xpose.msrb.mxu1 %v816_v21 }
 0x123   : > { %v871_v38 = vpop.permute.xlu2 %870 }
 0x12a   : > { %v723_v22 = vpop.permute.xlu1 %722 }
 0x12b   : > { %v729_v23 = vsel %vm727_vm2, %v723_v22, 0 }
 0x12c   : > { %738 = vmatpush.bf16.msra.mxu3 %v729_v23 }
 0x132   : > { %v749_v24 = vpop.permute.xlu1 %748 }
 0x133   : > { %v754_v25 = vsel %vm689_vm1, %v749_v24, 0 }
 0x134   : > { %763 = vmatpush.bf16.xpose.msrb.mxu3 %v754_v25 }
 0x13a   : > { %v809_v26 = vpop.permute.xlu1 %808 }
 0x13b   : > { %1346 = vmatmul.msk.bf16.vlgmr.msrb.gmra.mxu1 %vm689_vm1, %v809_v26 }
 0x143   : > { %v705_v27 = vpop.f32.mrf.mxu2 }
 0x144   : > { %v709_v28 = vsel %vm689_vm1, %v705_v27, -inf }
 0x145   : > { %710 = vmax.xlane.f32.xlu0 %v709_v28 }
 0x14b   : > { %v707_v29 = vpop.f32.mrf.mxu2 }
 0x14c   : > { %v1395_v29 = vld [vmem:[#allocation6 + $0x8] sm:$0xff] }
 0x14d   : > { %963 = vmatpush.bf16.msra.mxu1 %v1395_v29  ;;  %v1398_v29 = vld [vmem:[%s2071_s12] sm:$0xff] }
 0x1b8   : > { %v827_v30 = vpop.f32.mrf.mxu1  ;;  %v711_v31 = vpop.xlane.xlu0 %710 }
 0x1b9   : > { %v831_v32 = vsel %vm689_vm1, %v827_v30, -inf  ;;  %v712_v33 = vsub.f32 %v705_v27, %v711_v31 }
 0x1ba   : > { %832 = vmax.xlane.f32.xlu2 %v831_v32 }
 0x1bb   : > { %v713_v34 = vmul.f32 1.442695, %v712_v33 }
 0x1bd   : > { %1510 = vpow2.f32 %v713_v34 }
 0x1c0   : > { %v829_v35 = vpop.f32.mrf.mxu1 }
 0x1c3   : > { %v1511_v36 = vpop.eup %1510 }
 0x1c4   : > { %v715_v37 = vsel %vm689_vm1, %v1511_v36, 0.0 }
 0x1c5   : > { %716 = vadd.xlane.f32.xlu0 %v715_v37 }
 0x1d9   : > { %872 = vrot.lane.b32.xlu0 %v1935_v15, %s1720_s16  ;;  %s1191_s16 = scalar_lea.hbm %s2107_s15, %s1387_s27 }
 0x22d   : > { %v833_v39 = vpop.xlane.xlu2 %832 }
 0x22e   : > { %v834_v40 = vsub.f32 %v827_v30, %v833_v39  ;;  %v1394_v30 = vld [vmem:[#allocation6] sm:$0xff] }
 0x22f   : > { %964 = vmatpush.bf16.msra.mxu1 %v1394_v30 }
 0x230   : > { %v835_v41 = vmul.f32 1.442695, %v834_v40 }
 0x232   : > { %1512 = vpow2.f32 %v835_v41 }
 0x238   : > { %v1513_v42 = vpop.eup %1512  ;;  %v717_v43 = vpop.xlane.xlu0 %716 }
 0x239   : > { %v837_v44 = vsel %vm689_vm1, %v1513_v42, 0.0  ;;  %1514 = vrcp.f32 %v717_v43 }
 0x23a   : > { %838 = vadd.xlane.f32.xlu2 %v837_v44 }
 0x23f   : > { %v1515_v45 = vpop.eup %1514 }
 0x240   : > { %v719_v46 = vmul.f32 %v1515_v45, %v1511_v36  ;;  %v1503_v36 = vld [vmem:[%s2066_s7] ss:$0 sm:$0xff] }
 0x242   : > { %v720_v47 = vpack.c.bf16 %v719_v46, %v719_v46 }
 0x244   : > { %1343 = vmatmul.msk.bf16.vlgmr.msra.gmra.mxu3 %vm689_vm1, %v720_v47 }
 0x24b   : > { %v873_v48 = vpop.permute.xlu0 %872 }
 0x24c   : > { %v878_v49 = vsel %vm689_vm1, %v873_v48, 0 }
 0x24d   : > { %887 = vmatpush.bf16.xpose.msra.mxu3 %v878_v49 }
 0x254   : > { %1344 = vmatmul.msk.bf16.vlgmr.msrb.gmra.mxu3 %vm689_vm1, %v747_v19 }
 0x264   : > { %1348 = vmatmul.msk.bf16.vlgmr.msra.gmra.mxu3 %vm689_vm1, %v871_v38 }
 0x2ad   : > { %v839_v7 = vpop.xlane.xlu2 %838 }
 0x2c7   : > { %v740_v50 = vpop.f32.mrf.mxu3 }
 0x2c8   : > { %744 = vst.msk [vmem:[#allocation2] sm:$0xff] %vm689_vm1, %v740_v50 }
 0x2cf   : > { %v742_v51 = vpop.f32.mrf.mxu3 }
 0x2d7   : > { %v765_v52 = vpop.f32.mrf.mxu3 }
 0x2d8   : > { %v769_v53 = vsel %vm689_vm1, %v765_v52, -inf }
 0x2d9   : > { %770 = vmax.xlane.f32.xlu1 %v769_v53  ;;  %v1397_v53 = vld [vmem:[#allocation8 + $0x8] sm:$0xff] }
 0x2df   : > { %v767_v54 = vpop.f32.mrf.mxu3 }
 0x2e0   : > { %v1396_v54 = vld [vmem:[#allocation8] sm:$0xff] }
 0x2e7   : > { %v889_v55 = vpop.f32.mrf.mxu3 }
 0x2e8   : > { %v893_v56 = vsel %vm689_vm1, %v889_v55, -inf }
 0x2e9   : > { %894 = vmax.xlane.f32.xlu0 %v893_v56 }
 0x2ef   : > { %v891_v57 = vpop.f32.mrf.mxu3 }
 0x2f2   : > { %781 = vrot.lane.b32.xlu1 %v1935_v15, %s1721_s23 }
 0x34c   : > { %v771_v58 = vpop.xlane.xlu1 %770 }
 0x34d   : > { %v772_v59 = vsub.f32 %v765_v52, %v771_v58 }
 0x34f   : > { %v773_v60 = vmul.f32 1.442695, %v772_v59 }
 0x351   : > { %1516 = vpow2.f32 %v773_v60 }
 0x357   : > { %v1517_v61 = vpop.eup %1516 }
 0x358   : > { %v775_v62 = vsel %vm689_vm1, %v1517_v61, 0.0 }
 0x359   : > { %776 = vadd.xlane.f32.xlu2 %v775_v62 }
 0x35c   : > { %v895_v63 = vpop.xlane.xlu0 %894 }
 0x35d   : > { %v896_v0 = vsub.f32 %v889_v55, %v895_v63 }
 0x35f   : > { %v897_v1 = vmul.f32 1.442695, %v896_v0  ;;  %v1504_v0 = vld [vmem:[%s2067_s8] ss:$0 sm:$0xff] }
 0x361   : > { %1518 = vpow2.f32 %v897_v1 }
 0x362   : > { %1520 = vrcp.f32 %v839_v7 }
 0x364   : > { %v782_v2 = vpop.permute.xlu1 %781 }
 0x365   : > { %v787_v3 = vsel %vm727_vm2, %v782_v2, 0  ;;  %v1505_v2 = vld [vmem:[%s2068_s9] ss:$0 sm:$0xff] }
 0x366   : > { %796 = vmatpush.bf16.msrb.mxu0 %v787_v3 }
 0x367   : > { %v1519_v5 = vpop.eup %1518 }
 0x368   : > { %v899_v6 = vsel %vm689_vm1, %v1519_v5, 0.0  ;;  %v1521_v9 = vpop.eup %1520 }
 0x369   : > { %900 = vadd.xlane.f32.xlu0 %v899_v6  ;;  %v841_v11 = vmul.f32 %v1521_v9, %v1513_v42  ;;  %v1727_v42 = vmov 32.0  }
 0x36b   : > { %v842_v17 = vpack.c.bf16 %v841_v11, %v841_v11 }
 0x371   : > { %843 = vrot.lane.b32.xlu2 %v1935_v15, %s1722_s26 }
 0x37d   : > { %905 = vrot.lane.b32.xlu0 %v1935_v15, %s1723_s29 }
 0x3cc   : > { %v777_v8 = vpop.xlane.xlu2 %776 }
 0x3cd   : > { %1522 = vrcp.f32 %v777_v8  ;;  %v1506_v8 = vld [vmem:[%s2070_s11] ss:$0 sm:$0xff] }
 0x3d3   : > { %v1523_v10 = vpop.eup %1522 }
 0x3d4   : > { %v779_v12 = vmul.f32 %v1523_v10, %v1517_v61  ;;  %v844_v13 = vpop.permute.xlu2 %843 }
 0x3d5   : > { %v849_v14 = vsel %vm727_vm2, %v844_v13, 0 }
 0x3d6   : > { %858 = vmatpush.bf16.msrb.mxu2 %v849_v14  ;;  %v780_v16 = vpack.c.bf16 %v779_v12, %v779_v12 }
 0x3d8   : > { %1345 = vmatmul.msk.bf16.vlgmr.msrb.gmra.mxu0 %vm689_vm1, %v780_v16  ;;  %v1401_v16 = vld [vmem:[%s2071_s12 + $0x18] sm:$0xff] }
 0x3d9   : > { %1347 = vmatmul.msk.bf16.vlgmr.msrb.gmra.mxu2 %vm689_vm1, %v842_v17  ;;  %1136 = vmatpush.bf16.msrb.mxu3 %v1401_v16 }
 0x3da   : > { %1040 = vmatpush.bf16.msra.mxu2 %v1397_v53 }
 0x3dc   : > { %v901_v18 = vpop.xlane.xlu0 %900 }
 0x3dd   : > { %1524 = vrcp.f32 %v901_v18 }
 0x3de   : > { %1526 = vrcp.f32 %v1727_v42  ;;  %1041 = vmatpush.bf16.msra.mxu2 %v1396_v54 }
 0x3e3   : > { %v1525_v15 = vpop.eup %1524 }
 0x3e4   : > { %v903_v19 = vmul.f32 %v1525_v15, %v1519_v5  ;;  %v1527_v43 = vpop.eup %1526 }
 0x3e5   : > { %v977_v44 = vmul.f32 32.0, %v1527_v43  ;;  %vm981_vm6 = vweird.f32 %v1527_v43 }
 0x3e6   : > { %v904_v22 = vpack.c.bf16 %v903_v19, %v903_v19 }
 0x3e7   : > { %v978_v45 = vsub.f32 1.0, %v977_v44 }
 0x3e9   : > { %v979_v46 = vmul.f32 %v1527_v43, %v978_v45 }
 0x3eb   : > { %v980_v47 = vadd.f32 %v1527_v43, %v979_v46 }
 0x3ed   : > { %v1976_v48 = vsel %vm981_vm6, %v1527_v43, %v980_v47 }
 0x3ef   : > { %v906_v20 = vpop.permute.xlu0 %905 }
 0x3f0   : > { %v911_v21 = vsel %vm727_vm2, %v906_v20, 0  ;;  %v1400_v20 = vld [vmem:[%s2071_s12 + $0x10] sm:$0xff] }
 0x3f1   : > { %920 = vmatpush.bf16.msra.mxu0 %v911_v21  ;;  %1137 = vmatpush.bf16.msrb.mxu3 %v1400_v20 }
 0x3f4   : > { %1349 = vmatmul.msk.bf16.vlgmr.msra.gmra.mxu0 %vm689_vm1, %v904_v22 }
 0x455   : > { %v798_v23 = vpop.f32.mrf.mxu0 }
 0x456   : > { %803 = vrot.lane.b32.xlu1 %v798_v23, %s1724_s0  ;;  %s2109_s0 = sld [smem:[#allocation24_spill]] }
 0x45c   : > { %v860_v24 = vpop.f32.mrf.mxu2  ;;  %v1509_v16 = vld [vmem:[%s2109_s0] ss:$0 sm:$0xff] }
 0x45d   : > { %v800_v25 = vpop.f32.mrf.mxu0 }
 0x45e   : > { %865 = vrot.lane.b32.xlu1 %v860_v24, %s1725_s18  ;;  %v1399_v25 = vld [vmem:[%s2071_s12 + $0x8] sm:$0xff]  ;;  %s597_s18 = scalar_lea.vmem [#allocation9], %s1321_s30  ;;  %s1644_s30 = scalar_lea.hbm %s2107_s15, 16 }
 0x45f   : > { %1138 = vmatpush.bf16.msrb.mxu3 %v1399_v25  ;;  %s1193_s24 = sshll.u32 %s597_s18, 4  ;;  %s1194_s24 = int_to_ptr.vmem [resolvable:$true] %s1193_s24 }
 0x463   : > { %1139 = vmatpush.bf16.msrb.mxu3 %v1398_v29 }
 0x464   : > { %v862_v26 = vpop.f32.mrf.mxu2 }
 0x471   : > { %v922_v27 = vpop.f32.mrf.mxu0 }
 0x472   : > { %927 = vrot.lane.b32.xlu2 %v922_v27, %s1726_s19  ;;  %s1195_s19 = sshll.u32 %s1191_s16, 4  ;;  %s1196_s19 = int_to_ptr.hbm [resolvable:$true] %s1195_s19 }
 0x473   : > { %s1638_s28 = sshra.s32 %s1196_s19, 4  ;;  %s1639_s28 = int_to_ptr.hbm [resolvable:$true] %s1638_s28 }
 0x474   : > { %s1640_s27 = scalar_lea.hbm %s1639_s28, 8  ;;  %p1645_p5 = scmp.lt.s32.totalorder %s1639_s28, %s2107_s15 }
 0x475   : > { %p1641_p1 = scmp.ne.s32.totalorder %s1639_s28, %s1640_s27  ;;  %p1646_p6 = scmp.lt.s32.totalorder %s1644_s30, %s1640_s27 }
 0x477   : > { %p1642_p2 = pnand %p1641_p1, %p1853_p4  ;;  %p1647_p7 = por %p1646_p6, %p1645_p5 }
 0x479   : > { %v924_v28 = vpop.f32.mrf.mxu0  ;;  %p1643_p3 = pneg %p1642_p2 }
 0x47b   : > { %p1648_p9 = pnand %p1647_p7, %p1643_p3 }
 0x4c8   : > { %v804_v31 = vpop.permute.xlu1 %803 }
 0x4c9   : > { %807 = vst.msk [vmem:[#allocation2] sm:$0xff] %vm806_vm3, %v804_v31 }
 0x4cc   : > { %v928_v33 = vpop.permute.xlu2 %927 }
 0x4d0   : > { %v866_v32 = vpop.permute.xlu1 %865 }
 0x4d1   : > { %869 = vst.msk [vmem:[#allocation2] sm:$0xff] %vm868_vm4, %v866_v32 }
 0x4d2   : > { %931 = vst.msk [vmem:[#allocation2] sm:$0xff] %vm930_vm5, %v928_v33 }
 0x4d9   : > { %v932_v34 = vld [vmem:[#allocation2] sm:$0xff] }
 0x4da   : > { %v933_v35 = vpack.c.bf16 %v932_v34, %v932_v34 }
 0x4dc   : > { %1358 = vmatmul.msk.bf16.vlgmr.msra.gmra.mxu1 %vm634_vm0, %v933_v35 }
 0x559   : > { %v966_v37 = vpop.f32.mrf.mxu1 }
 0x55a   : > { %v967_v38 = vadd.f32 %v1503_v36, %v966_v37 }
 0x55c   : > { %v970_v39 = vadd.f32 %v967_v38, %v1923_v4 }
 0x55e   : > { %v973_v40 = vsel %vm634_vm0, %v970_v39, 0.0 }
 0x55f   : > { %974 = vadd.xlane.f32.xlu0 %v973_v40 }
 0x561   : > { %v968_v41 = vpop.f32.mrf.mxu1 }
 0x5d2   : > { %v975_v49 = vpop.xlane.xlu0 %974 }
 0x5d3   : > { %v983_v50 = vmul.f32 %v1976_v48, %v975_v49 }
 0x5d5   : > { %v984_v51 = vsub.f32 %v970_v39, %v983_v50 }
 0x5d7   : > { %v985_v52 = vmul.f32 %v984_v51, %v984_v51 }
 0x5d9   : > { %v986_v4 = vsel %vm634_vm0, %v985_v52, 0.0 }
 0x5da   : > { %987 = vadd.xlane.f32.xlu1 %v986_v4 }
 0x64d   : > { %v988_v55 = vpop.xlane.xlu1 %987 }
 0x64e   : > { %v989_v56 = vmul.f32 %v988_v55, %v1976_v48 }
 0x650   : > { %v990_v57 = vadd.f32 1e-05, %v989_v56  ;;  %v1507_v56 = vld [vmem:[%s2072_s13] ss:$0 sm:$0xff] }
 0x652   : > { %1528 = vrsqrt.f32 %v990_v57  ;;  %vm997_vm8 = vweird.f32 %v990_v57 }
 0x658   : > { %v1529_v58 = vpop.eup %1528 }
 0x659   : > { %v992_v59 = vmul.f32 %v1529_v58, %v990_v57  ;;  %vm998_vm7 = vweird.f32 %v1529_v58 }
 0x65a   : > { %vm999_vm9 = vmor %vm997_vm8, %vm998_vm7 }
 0x65b   : > { %v993_v60 = vmul.f32 %v1529_v58, %v992_v59 }
 0x65d   : > { %v994_v61 = vmul.f32 0.5, %v993_v60 }
 0x65f   : > { %v995_v62 = vsub.f32 1.5, %v994_v61 }
 0x661   : > { %v996_v63 = vmul.f32 %v1529_v58, %v995_v62 }
 0x663   : > { %v1000_v1 = vsel %vm999_vm9, %v1529_v58, %v996_v63 }
 0x664   : > { %v1001_v3 = vmul.f32 %v1000_v1, %v984_v51 }
 0x666   : > { %v1005_v5 = vmul.f32 %v1504_v0, %v1001_v3 }
 0x668   : > { %v1987_v6 = vadd.f32 %v1505_v2, %v1005_v5 }
 0x66a   : > { %v1010_v7 = vpack.c.bf16 %v1987_v6, %v1987_v6 }
 0x66c   : > { %1367 = vmatmul.msk.bf16.vlgmr.msra.gmra.mxu2 %vm634_vm0, %v1010_v7 }
 0x6ef   : > { %v1043_v9 = vpop.f32.mrf.mxu2 }
 0x6f0   : > { %v1044_v10 = vadd.f32 %v1506_v8, %v1043_v9 }
 0x6f2   : > { %v1048_v11 = vmul.f32 0.70710677, %v1044_v10  ;;  %v1047_v4 = vmul.f32 0.5, %v1044_v10 }
 0x6f4   : > { %v1049_v12 = vmul.f32 %v1048_v11, %v1048_v11 }
 0x6f6   : > { %v1050_v13 = vmin.f32 %v1049_v12, 16.0 }
 0x6f7   : > { %v1045_v14 = vpop.f32.mrf.mxu2 }
 0x6f8   : > { %v1051_v17 = vmul.f32 2.1237322e-06, %v1050_v13  ;;  %v1062_v18 = vmul.f32 3.8918573e-05, %v1050_v13 }
 0x6fa   : > { %v1052_v15 = vadd.f32 0.00028619796, %v1051_v17  ;;  %v1063_v19 = vadd.f32 0.001143296, %v1062_v18 }
 0x6fc   : > { %v1053_v21 = vmul.f32 %v1052_v15, %v1050_v13  ;;  %v1064_v22 = vmul.f32 %v1063_v19, %v1050_v13 }
 0x6fe   : > { %v1065_v23 = vadd.f32 0.014752088, %v1064_v22  ;;  %v1054_v24 = vadd.f32 0.0036580483, %v1053_v21 }
 0x700   : > { %v1066_v26 = vmul.f32 %v1065_v23, %v1050_v13  ;;  %v1055_v28 = vmul.f32 %v1054_v24, %v1050_v13 }
 0x702   : > { %v1067_v27 = vadd.f32 0.112945676, %v1066_v26  ;;  %v1056_v32 = vadd.f32 0.05243302, %v1055_v28 }
 0x704   : > { %v1068_v30 = vmul.f32 %v1067_v27, %v1050_v13  ;;  %v1057_v35 = vmul.f32 %v1056_v32, %v1050_v13 }
 0x706   : > { %v1069_v31 = vadd.f32 0.4994258, %v1068_v30  ;;  %v1058_v36 = vadd.f32 0.18741608, %v1057_v35 }
 0x708   : > { %v1070_v33 = vmul.f32 %v1069_v31, %v1050_v13  ;;  %v1059_v38 = vmul.f32 %v1058_v36, %v1050_v13  ;;  %v1508_v13 = vld [vmem:[%s2106_s25] ss:$0 sm:$0xff] }
 0x70a   : > { %v1071_v34 = vadd.f32 1.0, %v1070_v33  ;;  %v1060_v42 = vadd.f32 1.1283791, %v1059_v38 }
 0x70c   : > { %1530 = vrcp.f32 %v1071_v34  ;;  %v1083_v41 = vand.u32 2147483648, %v1071_v34  ;;  %v1081_v44 = vand.u32 2147483647, %v1071_v34  ;;  %vm1077_vm11 = vweird.f32 %v1071_v34 }
 0x70d   : > { %v1061_v47 = vmul.f32 %v1060_v42, %v1048_v11 }
 0x70e   : > { %v1084_v46 = vor.u32 1.1754944e-38, %v1083_v41  ;;  %vm1082_vm13 = vcmp.eq.f32.partialorder %v1081_v44, 8.507059e+37 }
 0x712   : > { %v1531_v37 = vpop.eup %1530 }
 0x713   : > { %v1073_v39 = vmul.f32 %v1531_v37, %v1071_v34  ;;  %vm1078_vm10 = vweird.f32 %v1531_v37 }
 0x714   : > { %vm1079_vm12 = vmor %vm1077_vm11, %vm1078_vm10 }
 0x715   : > { %v1074_v40 = vsub.f32 1.0, %v1073_v39 }
 0x717   : > { %v1075_v43 = vmul.f32 %v1531_v37, %v1074_v40 }
 0x719   : > { %v1076_v45 = vadd.f32 %v1531_v37, %v1075_v43 }
 0x71b   : > { %v1080_v49 = vsel %vm1079_vm12, %v1531_v37, %v1076_v45 }
 0x71c   : > { %v1085_v50 = vsel %vm1082_vm13, %v1084_v46, %v1080_v49 }
 0x71d   : > { %v1086_v51 = vmul.f32 %v1085_v50, %v1061_v47 }
 0x71f   : > { %v1368_v52 = vclamps-f32 %v1086_v51, 1.0 }
 0x721   : > { %v1089_v53 = vadd.f32 1.0, %v1368_v52 }
 0x723   : > { %v1090_v54 = vmul.f32 %v1089_v53, %v1047_v4 }
 0x725   : > { %v1091_v55 = vpack.c.bf16 %v1090_v54, %v1090_v54 }
 0x727   : > { %1385 = vmatmul.msk.bf16.vlgmr.msrb.gmra.mxu3 %vm1128_vm14, %v1091_v55 }
 0x7aa   : > { %v1141_v57 = vpop.f32.mrf.mxu3 }
 0x7ab   : > { %v1142_v58 = vadd.f32 %v1507_v56, %v1141_v57 }
 0x7ad   : > { %v1145_v59 = vadd.f32 %v1142_v58, %v1987_v6 }
 0x7af   : > { %v1148_v60 = vsel %vm634_vm0, %v1145_v59, 0.0 }
 0x7b0   : > { %1149 = vadd.xlane.f32.xlu2 %v1148_v60 }
 0x7b2   : > { %v1143_v61 = vpop.f32.mrf.mxu3 }
 0x823   : > { %v1150_v62 = vpop.xlane.xlu2 %1149 }
 0x824   : > { %v1151_v63 = vmul.f32 %v1150_v62, %v1976_v48 }
 0x826   : > { %v1152_v0 = vsub.f32 %v1145_v59, %v1151_v63 }
 0x828   : > { %v1153_v1 = vmul.f32 %v1152_v0, %v1152_v0 }
 0x82a   : > { %v1154_v2 = vsel %vm634_vm0, %v1153_v1, 0.0 }
 0x82b   : > { %1155 = vadd.xlane.f32.xlu0 %v1154_v2 }
 0x89e   : > { %v1156_v3 = vpop.xlane.xlu0 %1155 }
 0x89f   : > { %v1157_v5 = vmul.f32 %v1156_v3, %v1976_v48 }
 0x8a1   : > { %v1158_v7 = vadd.f32 1e-05, %v1157_v5 }
 0x8a3   : > { %1532 = vrsqrt.f32 %v1158_v7  ;;  %vm1165_vm1 = vweird.f32 %v1158_v7 }
 0x8a9   : > { %v1533_v6 = vpop.eup %1532 }
 0x8aa   : > { %v1160_v8 = vmul.f32 %v1533_v6, %v1158_v7  ;;  %vm1166_vm15 = vweird.f32 %v1533_v6 }
 0x8ab   : > { %vm1167_vm2 = vmor %vm1165_vm1, %vm1166_vm15 }
 0x8ac   : > { %v1161_v9 = vmul.f32 %v1533_v6, %v1160_v8 }
 0x8ae   : > { %v1162_v10 = vmul.f32 0.5, %v1161_v9 }
 0x8b0   : > { %v1163_v11 = vsub.f32 1.5, %v1162_v10 }
 0x8b2   : > { %v1164_v12 = vmul.f32 %v1533_v6, %v1163_v11 }
 0x8b4   : > { %v1168_v48 = vsel %vm1167_vm2, %v1533_v6, %v1164_v12 }
 0x8b5   : > { %v1169_v14 = vmul.f32 %v1168_v48, %v1152_v0 }
 0x8b7   : > { %v1173_v17 = vmul.f32 %v1508_v13, %v1169_v14 }
 0x8b9   : > { %v1177_v18 = vadd.f32 %v1509_v16, %v1173_v17 }
 0x8bb   : > { %1178 = vst.msk [vmem:[%s597_s18] sm:$0xff] %vm634_vm0, %v1177_v18 }
 0x8bc   : > { %1651 = shalt.err (!%p1648_p9)
}
 0x8bd   : > { %1414 = dma.vmem_to_hbm [thread:$0]  (%p1853_p4), %s1194_s24, 128, %s1196_s19, %s1180_s20  }
 0x8be PF: > { %s2110_s21 = sld [smem:[#allocation16_spill]] }
 0x8bf   : > { %s2111_s16 = sld [smem:[#allocation13_spill]] }
 0x8c4   : > { %p1436_p10 = scmp.ge.s32.totalorder %s2110_s21, 2 }
 0x8c5   : > { %s1207_s29 = sand.u32 1, %s2111_s16  }
 0x8c6   : > { %p1427_p11 = pnand %p1436_p10, %p1860_p8  ;;  %s1208_s0 = scalar_lea.sflag [#allocation5], %s1207_s29 }
 0x8c8   : > { %p1428_p12 = pneg %p1427_p11 }
 0x8ca   : > { %1685 = dma.done.wait (%p1428_p12), %s1208_s0, 128  }
 0x8cb   : > { %1687 = vsyncadd (%p1428_p12), %s1208_s0, 4294967168  ;;  %s31_s26 = sadd.s32 1, %s2110_s21   ;;  %s2113_s18 = sld [smem:[#allocation14_spill]] }
 0x8cc   : > { %p28_p13 = scmp.ge.s32.totalorder %s31_s26, 4   ;;  %s2114_s23 = sld [smem:[#allocation20_spill]] }
 0x8cd   : > { %s2115_s24 = sld [smem:[#allocation15_spill]]  ;;  %s2117_s21 = smov %s1694_s22 }
 0x8ce   : > { %s2116_s25 = sld [smem:[#allocation17_spill]]  ;;  %30 = sbr.rel (!%p28_p13) target bundleno = 12 (0xc), region = 135 }
 0x8d1   : > { %s2118_s22 = smov %s2113_s18 }
 0x8d3   :  { %1214 = vsyncpa [#allocation4], 1 }
 0x8d4   :  { %1216 = vsyncpa [#allocation4 + $0x1], 1 }
 0x8d5   :  { %1217 = vsyncpa [#allocation7], 1 }
 0x8d6   :  { %1218 = vsyncpa [#allocation5], 1 }
 0x8d7   :  { %1220 = vsyncpa [#allocation5 + $0x1], 1 }

</bundles_post_ra>
